<compile_context>
chip_gen: v6e
topology: v6e:2x2x1
jax: 0.10.0
libtpu: 0.0.40
codegen_flags: <defaults>
</compile_context>

<pallas_src>
import functools
from functools import reduce

import jax
import jax.numpy as jnp
from jax import lax
from jax.experimental import pallas as pl
from jax.experimental.pallas import tpu as pltpu


# -----------------------------------------------------------------------------
# Pallas kernel (one grid step == one independent sequence / batch element)
# -----------------------------------------------------------------------------
def _drqnet_kernel(num_layers, num_fc, seq_len, hidden_size, *refs):
    # refs (per grid step, batch dim squeezed away):
    #   x_ref   (seq, F)    bf16
    #   h0_ref  (L, H)      f32     initial hidden state (PyTorch layer order)
    #   c0_ref  (L, H)      f32     initial cell state
    #   [w_ih (in,4H) bf16, w_hh (H,4H) bf16, bias (1,4H) f32] * num_layers
    #   [w (in,out) bf16, b (1,out) f32]                       * num_fc
    #   q_ref   (seq, A_pad) f32    lane-dense (padded) Q output
    #   hN_ref  (L, H)      f32     final hidden state
    #   cN_ref  (L, H)      f32     final cell state
    #   hs_ref  (seq, H)    bf16 scratch  (current layer's hidden outputs)
    #   pg_ref  (seq, 4H)   f32  scratch  (hoisted input-gate projections)
    idx = 0
    x_ref = refs[idx]; idx += 1
    h0_ref = refs[idx]; idx += 1
    c0_ref = refs[idx]; idx += 1
    lstm_params = []
    for _ in range(num_layers):
        lstm_params.append((refs[idx], refs[idx + 1], refs[idx + 2]))
        idx += 3
    fc_params = []
    for _ in range(num_fc):
        fc_params.append((refs[idx], refs[idx + 1]))
        idx += 2
    q_ref = refs[idx]; idx += 1
    hN_ref = refs[idx]; idx += 1
    cN_ref = refs[idx]; idx += 1
    hs_ref = refs[idx]; idx += 1
    pg_ref = refs[idx]

    H = hidden_size
    # Full unroll only for small sequences; bounded unroll otherwise.
    unroll = True if seq_len <= 16 else 8

    h0_all = h0_ref[...]                                      # (L, H) f32
    c0_all = c0_ref[...]
    h_finals, c_finals = [], []

    # ---------------- LSTM stack (layer-major) ----------------
    for l, (w_ih, w_hh, b) in enumerate(lstm_params):
        # Batched input projection for the whole sequence — one MXU matmul,
        # off the serial recurrence chain. bf16 operands, f32 accumulation.
        x_in = x_ref[...] if l == 0 else hs_ref[...]          # bf16
        pg_ref[...] = (
            jnp.dot(x_in, w_ih[...], preferred_element_type=jnp.float32)
            + b[...]
        )                                                      # (seq, 4H) f32

        # Hoist the recurrent weight load off the serial time chain.
        w_hh_v = w_hh[...]                                     # (H, 4H) bf16

        def step(t, carry, _w_hh=w_hh_v):
            h_prev, c_prev = carry
            # Single fused recurrent matmul per step.
            rec = jnp.dot(h_prev.astype(jnp.bfloat16), _w_hh,
                          preferred_element_type=jnp.float32)  # (1, 4H)
            gates = pg_ref[pl.ds(t, 1), :] + rec               # (1, 4H) f32
            # One sigmoid + one tanh over the full gate vreg (EUP), then take
            # the per-gate slices from the results. All gate math stays f32.
            sig = jax.nn.sigmoid(gates)
            tah = jnp.tanh(gates)
            i_g = sig[:, 0:H]
            f_g = sig[:, H:2 * H]
            g_g = tah[:, 2 * H:3 * H]
            o_g = sig[:, 3 * H:4 * H]
            c_new = f_g * c_prev + i_g * g_g
            h_new = o_g * jnp.tanh(c_new)
            hs_ref[pl.ds(t, 1), :] = h_new.astype(jnp.bfloat16)
            return (h_new, c_new)

        h_f, c_f = lax.fori_loop(
            0, seq_len, step,
            (h0_all[l:l + 1, :], c0_all[l:l + 1, :]),
            unroll=unroll)
        h_finals.append(h_f)
        c_finals.append(c_f)

    hN_ref[...] = jnp.concatenate(h_finals, axis=0)            # (L, H) f32
    cN_ref[...] = jnp.concatenate(c_finals, axis=0)

    # ---------------- FC head: Linear (+ReLU) ... Linear ----------------
    feat = hs_ref[...]                                         # (seq, H) bf16
    y = None
    for j, (w, b) in enumerate(fc_params):
        y = jnp.dot(feat, w[...], preferred_element_type=jnp.float32) + b[...]
        if j < num_fc - 1:
            feat = jnp.maximum(y, 0.0).astype(jnp.bfloat16)

    q_ref[...] = y.astype(q_ref.dtype)                         # (seq, A_pad)


# -----------------------------------------------------------------------------
# Core pallas_call wrapper: B independent sequences, parallel grid axis.
# -----------------------------------------------------------------------------
def _drqnet_pallas(x, h0, c0, params, *, hidden_size, num_layers, num_actions):
    """x: (B, seq, F) bf16; h0, c0: (B, L, H) f32 → (q, hN, cN)."""
    B, seq, F = x.shape
    H = hidden_size
    L = num_layers
    lstm_params, fc_params = params
    num_fc = len(fc_params)

    # Lane-dense output head: pad the final FC to a multiple of 128 lanes.
    a_pad = ((num_actions + 127) // 128) * 128
    w_last, b_last = fc_params[-1]
    pad = a_pad - w_last.shape[1]
    if pad:
        w_last = jnp.pad(w_last, ((0, 0), (0, pad)))
        b_last = jnp.pad(b_last, ((0, 0), (0, pad)))
    fc_padded = list(fc_params[:-1]) + [(w_last, b_last)]

    flat_args = [x, h0, c0]
    for (w_ih, w_hh, b) in lstm_params:
        flat_args += [w_ih, w_hh, b]
    for (w, b) in fc_padded:
        flat_args += [w, b]

    def _full(a):
        nd = a.ndim
        return pl.BlockSpec(a.shape, lambda i, _n=nd: (0,) * _n)

    in_specs = [
        pl.BlockSpec((None, seq, F), lambda i: (i, 0, 0)),   # x (batch-blocked)
        pl.BlockSpec((None, L, H), lambda i: (i, 0, 0)),     # h0
        pl.BlockSpec((None, L, H), lambda i: (i, 0, 0)),     # c0
    ] + [_full(a) for a in flat_args[3:]]                    # weights, resident

    out_shape = (
        jax.ShapeDtypeStruct((B, seq, a_pad), jnp.float32),  # q (lane-dense)
        jax.ShapeDtypeStruct((B, L, H), jnp.float32),        # final hidden
        jax.ShapeDtypeStruct((B, L, H), jnp.float32),        # final cell
    )
    out_specs = (
        pl.BlockSpec((None, seq, a_pad), lambda i: (i, 0, 0)),
        pl.BlockSpec((None, L, H), lambda i: (i, 0, 0)),
        pl.BlockSpec((None, L, H), lambda i: (i, 0, 0)),
    )

    kernel = functools.partial(_drqnet_kernel, num_layers, num_fc, seq, H)

    # Total resident footprint (weights + per-sequence block + scratch) is
    # ~100 KiB — far under scoped VMEM on v5e/v6e/v7x; no vmem override needed.
    q, hN, cN = pl.pallas_call(
        kernel,
        grid=(B,),
        out_shape=out_shape,
        in_specs=in_specs,
        out_specs=out_specs,
        scratch_shapes=[
            pltpu.VMEM((seq, H), jnp.bfloat16),       # hs: hidden-state slab
            pltpu.VMEM((seq, 4 * H), jnp.float32),    # pg: input projections
        ],
        compiler_params=pltpu.CompilerParams(
            dimension_semantics=("parallel",)),
    )(*flat_args)
    return q, hN, cN


# -----------------------------------------------------------------------------
# Module-faithful wrapper: state.view(-1, 1, F), explicit (hidden, cell) state.
# -----------------------------------------------------------------------------
def drqnet_forward(state, hidden, cell, params, *, state_shape, hidden_size,
                   num_layers, num_actions):
    """q, (h', c') = DRQNet.forward(state) with (hidden, cell) threaded explicitly."""
    flat = reduce(lambda a, b: a * b, state_shape)
    x = state.reshape(-1, flat).astype(jnp.bfloat16)[None]     # (1, seq, F)
    seq = x.shape[1]
    h0 = jnp.transpose(hidden, (1, 0, 2))                      # (1, L, H)
    c0 = jnp.transpose(cell, (1, 0, 2))
    q, hN, cN = _drqnet_pallas(
        x, h0, c0, params, hidden_size=hidden_size,
        num_layers=num_layers, num_actions=num_actions)
    q = q[0, :, :num_actions].reshape(seq, 1, num_actions)     # strip lane pad
    return q, (jnp.transpose(hN, (1, 0, 2)), jnp.transpose(cN, (1, 0, 2)))


# -----------------------------------------------------------------------------
# Deterministic parameter construction (shapes mirror nn.LSTM / nn.Linear;
# weights transposed for the kernel; matmul weights stored in bf16).
# -----------------------------------------------------------------------------
def init_params(key, *, flat_size, hidden_size, num_layers, hidden_layers,
                num_actions):
    def uniform(k, shape, bound):
        return jax.random.uniform(k, shape, jnp.float32, -bound, bound)

    n_keys = 4 * num_layers + 2 * (len(hidden_layers) + 1)
    keys = iter(jax.random.split(key, n_keys))

    lstm_params = []
    k_lstm = 1.0 / float(hidden_size) ** 0.5
    for l in range(num_layers):
        in_dim = flat_size if l == 0 else hidden_size
        w_ih = uniform(next(keys), (in_dim, 4 * hidden_size), k_lstm)
        w_hh = uniform(next(keys), (hidden_size, 4 * hidden_size), k_lstm)
        b_ih = uniform(next(keys), (1, 4 * hidden_size), k_lstm)
        b_hh = uniform(next(keys), (1, 4 * hidden_size), k_lstm)
        lstm_params.append((w_ih.astype(jnp.bfloat16),
                            w_hh.astype(jnp.bfloat16),
                            b_ih + b_hh))                 # biases folded, f32

    neurons = [hidden_size] + list(hidden_layers) + [num_actions]
    fc_params = []
    for i in range(len(neurons) - 1):
        k_fc = 1.0 / float(neurons[i]) ** 0.5
        w = uniform(next(keys), (neurons[i], neurons[i + 1]), k_fc)
        b = uniform(next(keys), (1, neurons[i + 1]), k_fc)
        fc_params.append((w.astype(jnp.bfloat16), b))
    return lstm_params, fc_params


# -----------------------------------------------------------------------------
# Pure-JAX reference mirroring the kernel's bf16-operand / f32-accumulate math.
# -----------------------------------------------------------------------------
def _mx(a_f32, w_bf16):
    # Emulates an MXU bf16 x bf16 -> f32 matmul.
    return jnp.dot(a_f32.astype(jnp.bfloat16).astype(jnp.float32),
                   w_bf16.astype(jnp.float32))


def reference_forward(state, hidden, cell, params, *, state_shape, hidden_size,
                      num_layers, num_actions):
    flat = reduce(lambda a, b: a * b, state_shape)
    x = state.reshape(-1, flat).astype(jnp.float32)
    seq = x.shape[0]
    H = hidden_size
    lstm_params, fc_params = params

    layer_in = x
    h_out, c_out = [], []
    for l, (w_ih, w_hh, b) in enumerate(lstm_params):
        pre = _mx(layer_in, w_ih) + b                     # (seq, 4H)
        h = hidden[l].astype(jnp.float32)                 # (1, H)
        c = cell[l].astype(jnp.float32)
        outs = []
        for t in range(seq):
            gates = pre[t:t + 1, :] + _mx(h, w_hh)
            i_g = jax.nn.sigmoid(gates[:, 0:H])
            f_g = jax.nn.sigmoid(gates[:, H:2 * H])
            g_g = jnp.tanh(gates[:, 2 * H:3 * H])
            o_g = jax.nn.sigmoid(gates[:, 3 * H:4 * H])
            c = f_g * c + i_g * g_g
            h = o_g * jnp.tanh(c)
            outs.append(h)
        layer_in = jnp.concatenate(outs, axis=0)
        h_out.append(h)
        c_out.append(c)

    feat = layer_in
    for j, (w, b) in enumerate(fc_params):
        feat = _mx(feat, w) + b
        if j < len(fc_params) - 1:
            feat = jnp.maximum(feat, 0.0)
    q = feat.reshape(seq, 1, num_actions)
    return q, jnp.stack(h_out, axis=0), jnp.stack(c_out, axis=0)


if __name__ == "__main__":
    # Small, self-consistent configuration.
    state_shape = (4, 16)          # flattened_state_size = 64
    hidden_size = 32
    num_layers = 2
    hidden_layers = [32]
    num_actions = 4
    seq = 8                        # state.view(-1, 1, 64) -> 8 time steps
    flat_size = reduce(lambda a, b: a * b, state_shape)

    key = jax.random.PRNGKey(0)
    k_s1, k_s2, k_sb, k_params = jax.random.split(key, 4)
    params = init_params(
        k_params, flat_size=flat_size, hidden_size=hidden_size,
        num_layers=num_layers, hidden_layers=hidden_layers,
        num_actions=num_actions)

    cfg = dict(state_shape=state_shape, hidden_size=hidden_size,
               num_layers=num_layers, num_actions=num_actions)

    # ---- Module-faithful path: implicit batch 1, (h, c) carried across calls
    h = jnp.zeros((num_layers, 1, hidden_size), jnp.float32)   # init_hidden(1)
    c = jnp.zeros((num_layers, 1, hidden_size), jnp.float32)
    state1 = jax.random.normal(k_s1, (seq,) + state_shape, jnp.float32)
    state2 = jax.random.normal(k_s2, (seq,) + state_shape, jnp.float32)

    q1, (h1, c1) = drqnet_forward(state1, h, c, params, **cfg)
    q2, (h2, c2) = drqnet_forward(state2, h1, c1, params, **cfg)
    jax.block_until_ready((q2, h2, c2))

    q1r, h1r, c1r = reference_forward(state1, h, c, params, **cfg)
    q2r, h2r, c2r = reference_forward(state2, h1r, c1r, params, **cfg)

    assert q1.shape == (seq, 1, num_actions), q1.shape
    assert h2.shape == (num_layers, 1, hidden_size), h2.shape
    for got, ref in [(q1, q1r), (q2, q2r), (h2, h2r), (c2, c2r)]:
        err = float(jnp.max(jnp.abs(got - ref)))
        assert jnp.allclose(got, ref, rtol=3e-2, atol=3e-2), err

    # ---- Batched path: independent sequences sharded on a "parallel" grid axis
    B = 2
    states_b = jax.random.normal(k_sb, (B, seq) + state_shape, jnp.float32)
    x_b = states_b.reshape(B, seq, flat_size).astype(jnp.bfloat16)
    h0_b = jnp.zeros((B, num_layers, hidden_size), jnp.float32)
    c0_b = jnp.zeros((B, num_layers, hidden_size), jnp.float32)
    q_b, h_b, c_b = _drqnet_pallas(
        x_b, h0_b, c0_b, params, hidden_size=hidden_size,
        num_layers=num_layers, num_actions=num_actions)
    jax.block_until_ready((q_b, h_b, c_b))
    for i in range(B):
        qr, hr, cr = reference_forward(
            states_b[i],
            jnp.zeros((num_layers, 1, hidden_size), jnp.float32),
            jnp.zeros((num_layers, 1, hidden_size), jnp.float32),
            params, **cfg)
        assert jnp.allclose(q_b[i, :, :num_actions], qr[:, 0, :],
                            rtol=3e-2, atol=3e-2)
        assert jnp.allclose(h_b[i], hr[:, 0, :], rtol=3e-2, atol=3e-2)
        assert jnp.allclose(c_b[i], cr[:, 0, :], rtol=3e-2, atol=3e-2)

    print("KERNEL_OK")
</pallas_src>

<mosaic_0001>
module attributes {stable_mosaic.version = 11 : i64} {
  func.func @_drqnet_kernel(%arg0: i32, %arg1: memref<1x8x64xbf16, #tpu.memory_space<vmem>>, %arg2: memref<1x2x32xf32, #tpu.memory_space<vmem>>, %arg3: memref<1x2x32xf32, #tpu.memory_space<vmem>>, %arg4: memref<64x128xbf16, #tpu.memory_space<vmem>>, %arg5: memref<32x128xbf16, #tpu.memory_space<vmem>>, %arg6: memref<1x128xf32, #tpu.memory_space<vmem>>, %arg7: memref<32x128xbf16, #tpu.memory_space<vmem>>, %arg8: memref<32x128xbf16, #tpu.memory_space<vmem>>, %arg9: memref<1x128xf32, #tpu.memory_space<vmem>>, %arg10: memref<32x32xbf16, #tpu.memory_space<vmem>>, %arg11: memref<1x32xf32, #tpu.memory_space<vmem>>, %arg12: memref<32x128xbf16, #tpu.memory_space<vmem>>, %arg13: memref<1x128xf32, #tpu.memory_space<vmem>>, %arg14: memref<1x8x128xf32, #tpu.memory_space<vmem>>, %arg15: memref<1x2x32xf32, #tpu.memory_space<vmem>>, %arg16: memref<1x2x32xf32, #tpu.memory_space<vmem>>, %arg17: memref<8x32xbf16, #tpu.memory_space<vmem>>, %arg18: memref<8x128xf32, #tpu.memory_space<vmem>>) attributes {dimension_semantics = [#tpu.dimension_semantics<parallel>], iteration_bounds = array<i64: 1>, scalar_prefetch = 0 : i64, scratch_operands = 2 : i64, tpu.core_type = #tpu.core_type<tc>, window_params = [{transform_indices = @transform_0, window_bounds = array<i64: 1, 8, 64>}, {transform_indices = @transform_1, window_bounds = array<i64: 1, 2, 32>}, {transform_indices = @transform_2, window_bounds = array<i64: 1, 2, 32>}, {pipeline_mode = #tpu.pipeline_mode<synchronous>, transform_indices = @transform_3, window_bounds = array<i64: 64, 128>}, {pipeline_mode = #tpu.pipeline_mode<synchronous>, transform_indices = @transform_4, window_bounds = array<i64: 32, 128>}, {pipeline_mode = #tpu.pipeline_mode<synchronous>, transform_indices = @transform_5, window_bounds = array<i64: 1, 128>}, {pipeline_mode = #tpu.pipeline_mode<synchronous>, transform_indices = @transform_6, window_bounds = array<i64: 32, 128>}, {pipeline_mode = #tpu.pipeline_mode<synchronous>, transform_indices = @transform_7, window_bounds = array<i64: 32, 128>}, {pipeline_mode = #tpu.pipeline_mode<synchronous>, transform_indices = @transform_8, window_bounds = array<i64: 1, 128>}, {pipeline_mode = #tpu.pipeline_mode<synchronous>, transform_indices = @transform_9, window_bounds = array<i64: 32, 32>}, {pipeline_mode = #tpu.pipeline_mode<synchronous>, transform_indices = @transform_10, window_bounds = array<i64: 1, 32>}, {pipeline_mode = #tpu.pipeline_mode<synchronous>, transform_indices = @transform_11, window_bounds = array<i64: 32, 128>}, {pipeline_mode = #tpu.pipeline_mode<synchronous>, transform_indices = @transform_12, window_bounds = array<i64: 1, 128>}, {transform_indices = @transform_13, window_bounds = array<i64: 1, 8, 128>}, {transform_indices = @transform_14, window_bounds = array<i64: 1, 2, 32>}, {transform_indices = @transform_15, window_bounds = array<i64: 1, 2, 32>}]} {
    %c0 = arith.constant 0 : index
    %c0_0 = arith.constant 0 : index
    %c0_1 = arith.constant 0 : index
    %0 = vector.load %arg2[%c0, %c0_0, %c0_1] : memref<1x2x32xf32, #tpu.memory_space<vmem>>, vector<1x2x32xf32>
    %1 = vector.shape_cast %0 : vector<1x2x32xf32> to vector<2x32xf32>
    %c0_2 = arith.constant 0 : index
    %c0_3 = arith.constant 0 : index
    %c0_4 = arith.constant 0 : index
    %2 = vector.load %arg3[%c0_2, %c0_3, %c0_4] : memref<1x2x32xf32, #tpu.memory_space<vmem>>, vector<1x2x32xf32>
    %3 = vector.shape_cast %2 : vector<1x2x32xf32> to vector<2x32xf32>
    %c0_5 = arith.constant 0 : index
    %c0_6 = arith.constant 0 : index
    %c0_7 = arith.constant 0 : index
    %4 = vector.load %arg1[%c0_5, %c0_6, %c0_7] : memref<1x8x64xbf16, #tpu.memory_space<vmem>>, vector<1x8x64xbf16>
    %5 = vector.shape_cast %4 : vector<1x8x64xbf16> to vector<8x64xbf16>
    %c0_8 = arith.constant 0 : index
    %c0_9 = arith.constant 0 : index
    %6 = vector.load %arg4[%c0_8, %c0_9] : memref<64x128xbf16, #tpu.memory_space<vmem>>, vector<64x128xbf16>
    %cst = arith.constant dense<0.000000e+00> : vector<8x128xf32>
    %7 = tpu.matmul %5, %6, %cst {dimension_numbers = #tpu.dot_dimension_numbers<[1], [0], [0], [1], [0, 0, 1, 1], [], []>} : vector<8x64xbf16>, vector<64x128xbf16>, vector<8x128xf32> -> vector<8x128xf32>
    %c0_10 = arith.constant 0 : index
    %c0_11 = arith.constant 0 : index
    %8 = vector.load %arg6[%c0_10, %c0_11] : memref<1x128xf32, #tpu.memory_space<vmem>>, vector<1x128xf32>
    %9 = vector.broadcast %8 : vector<1x128xf32> to vector<8x128xf32>
    %10 = arith.addf %7, %9 : vector<8x128xf32>
    %c0_12 = arith.constant 0 : index
    %c0_13 = arith.constant 0 : index
    %11 = vector.load %arg18[%c0_12, %c0_13] : memref<8x128xf32, #tpu.memory_space<vmem>>, vector<8x128xf32>
    tpu.vector_store %arg18[%c0_12, %c0_13], %10 {strides = array<i32>} : memref<8x128xf32, #tpu.memory_space<vmem>>, vector<8x128xf32>,
    %c0_14 = arith.constant 0 : index
    %c0_15 = arith.constant 0 : index
    %12 = vector.load %arg5[%c0_14, %c0_15] : memref<32x128xbf16, #tpu.memory_space<vmem>>, vector<32x128xbf16>
    %13 = vector.extract_strided_slice %1 {offsets = [0, 0], sizes = [1, 32], strides = [1, 1]} : vector<2x32xf32> to vector<1x32xf32>
    %14 = vector.extract_strided_slice %3 {offsets = [0, 0], sizes = [1, 32], strides = [1, 1]} : vector<2x32xf32> to vector<1x32xf32>
    %c0_i32 = arith.constant 0 : i32
    %15 = arith.truncf %13 : vector<1x32xf32> to vector<1x32xbf16>
    %cst_16 = arith.constant dense<0.000000e+00> : vector<1x128xf32>
    %16 = tpu.matmul %15, %12, %cst_16 {dimension_numbers = #tpu.dot_dimension_numbers<[1], [0], [0], [1], [0, 0, 1, 1], [], []>} : vector<1x32xbf16>, vector<32x128xbf16>, vector<1x128xf32> -> vector<1x128xf32>
    %17 = arith.index_cast %c0_i32 : i32 to index
    %c0_17 = arith.constant 0 : index
    %18 = vector.load %arg18[%17, %c0_17] : memref<8x128xf32, #tpu.memory_space<vmem>>, vector<1x128xf32>
    %19 = arith.addf %18, %16 : vector<1x128xf32>
    %20 = arith.negf %19 : vector<1x128xf32>
    %21 = math.exp %20 : vector<1x128xf32>
    %cst_18 = arith.constant 1.000000e+00 : f32
    %22 = vector.broadcast %cst_18 : f32 to vector<1x128xf32>
    %23 = arith.addf %22, %21 : vector<1x128xf32>
    %24 = arith.divf %22, %23 : vector<1x128xf32>
    %25 = math.tanh %19 : vector<1x128xf32>
    %26 = vector.extract_strided_slice %24 {offsets = [0, 0], sizes = [1, 32], strides = [1, 1]} : vector<1x128xf32> to vector<1x32xf32>
    %27 = vector.extract_strided_slice %24 {offsets = [0, 32], sizes = [1, 32], strides = [1, 1]} : vector<1x128xf32> to vector<1x32xf32>
    %28 = vector.extract_strided_slice %25 {offsets = [0, 64], sizes = [1, 32], strides = [1, 1]} : vector<1x128xf32> to vector<1x32xf32>
    %29 = vector.extract_strided_slice %24 {offsets = [0, 96], sizes = [1, 32], strides = [1, 1]} : vector<1x128xf32> to vector<1x32xf32>
    %30 = arith.mulf %27, %14 : vector<1x32xf32>
    %31 = arith.mulf %26, %28 : vector<1x32xf32>
    %32 = arith.addf %30, %31 : vector<1x32xf32>
    %33 = math.tanh %32 : vector<1x32xf32>
    %34 = arith.mulf %29, %33 : vector<1x32xf32>
    %35 = arith.truncf %34 : vector<1x32xf32> to vector<1x32xbf16>
    %36 = arith.index_cast %c0_i32 : i32 to index
    %c0_19 = arith.constant 0 : index
    %37 = vector.load %arg17[%36, %c0_19] : memref<8x32xbf16, #tpu.memory_space<vmem>>, vector<1x32xbf16>
    tpu.vector_store %arg17[%36, %c0_19], %35 {strides = array<i32>} : memref<8x32xbf16, #tpu.memory_space<vmem>>, vector<1x32xbf16>,
    %c1_i32 = arith.constant 1 : i32
    %38 = arith.truncf %34 : vector<1x32xf32> to vector<1x32xbf16>
    %cst_20 = arith.constant dense<0.000000e+00> : vector<1x128xf32>
    %39 = tpu.matmul %38, %12, %cst_20 {dimension_numbers = #tpu.dot_dimension_numbers<[1], [0], [0], [1], [0, 0, 1, 1], [], []>} : vector<1x32xbf16>, vector<32x128xbf16>, vector<1x128xf32> -> vector<1x128xf32>
    %40 = arith.index_cast %c1_i32 : i32 to index
    %c0_21 = arith.constant 0 : index
    %41 = vector.load %arg18[%40, %c0_21] : memref<8x128xf32, #tpu.memory_space<vmem>>, vector<1x128xf32>
    %42 = arith.addf %41, %39 : vector<1x128xf32>
    %43 = arith.negf %42 : vector<1x128xf32>
    %44 = math.exp %43 : vector<1x128xf32>
    %cst_22 = arith.constant 1.000000e+00 : f32
    %45 = vector.broadcast %cst_22 : f32 to vector<1x128xf32>
    %46 = arith.addf %45, %44 : vector<1x128xf32>
    %47 = arith.divf %45, %46 : vector<1x128xf32>
    %48 = math.tanh %42 : vector<1x128xf32>
    %49 = vector.extract_strided_slice %47 {offsets = [0, 0], sizes = [1, 32], strides = [1, 1]} : vector<1x128xf32> to vector<1x32xf32>
    %50 = vector.extract_strided_slice %47 {offsets = [0, 32], sizes = [1, 32], strides = [1, 1]} : vector<1x128xf32> to vector<1x32xf32>
    %51 = vector.extract_strided_slice %48 {offsets = [0, 64], sizes = [1, 32], strides = [1, 1]} : vector<1x128xf32> to vector<1x32xf32>
    %52 = vector.extract_strided_slice %47 {offsets = [0, 96], sizes = [1, 32], strides = [1, 1]} : vector<1x128xf32> to vector<1x32xf32>
    %53 = arith.mulf %50, %32 : vector<1x32xf32>
    %54 = arith.mulf %49, %51 : vector<1x32xf32>
    %55 = arith.addf %53, %54 : vector<1x32xf32>
    %56 = math.tanh %55 : vector<1x32xf32>
    %57 = arith.mulf %52, %56 : vector<1x32xf32>
    %58 = arith.truncf %57 : vector<1x32xf32> to vector<1x32xbf16>
    %59 = arith.index_cast %c1_i32 : i32 to index
    %c0_23 = arith.constant 0 : index
    %60 = vector.load %arg17[%59, %c0_23] : memref<8x32xbf16, #tpu.memory_space<vmem>>, vector<1x32xbf16>
    tpu.vector_store %arg17[%59, %c0_23], %58 {strides = array<i32>} : memref<8x32xbf16, #tpu.memory_space<vmem>>, vector<1x32xbf16>,
    %c2_i32 = arith.constant 2 : i32
    %61 = arith.truncf %57 : vector<1x32xf32> to vector<1x32xbf16>
    %cst_24 = arith.constant dense<0.000000e+00> : vector<1x128xf32>
    %62 = tpu.matmul %61, %12, %cst_24 {dimension_numbers = #tpu.dot_dimension_numbers<[1], [0], [0], [1], [0, 0, 1, 1], [], []>} : vector<1x32xbf16>, vector<32x128xbf16>, vector<1x128xf32> -> vector<1x128xf32>
    %63 = arith.index_cast %c2_i32 : i32 to index
    %c0_25 = arith.constant 0 : index
    %64 = vector.load %arg18[%63, %c0_25] : memref<8x128xf32, #tpu.memory_space<vmem>>, vector<1x128xf32>
    %65 = arith.addf %64, %62 : vector<1x128xf32>
    %66 = arith.negf %65 : vector<1x128xf32>
    %67 = math.exp %66 : vector<1x128xf32>
    %cst_26 = arith.constant 1.000000e+00 : f32
    %68 = vector.broadcast %cst_26 : f32 to vector<1x128xf32>
    %69 = arith.addf %68, %67 : vector<1x128xf32>
    %70 = arith.divf %68, %69 : vector<1x128xf32>
    %71 = math.tanh %65 : vector<1x128xf32>
    %72 = vector.extract_strided_slice %70 {offsets = [0, 0], sizes = [1, 32], strides = [1, 1]} : vector<1x128xf32> to vector<1x32xf32>
    %73 = vector.extract_strided_slice %70 {offsets = [0, 32], sizes = [1, 32], strides = [1, 1]} : vector<1x128xf32> to vector<1x32xf32>
    %74 = vector.extract_strided_slice %71 {offsets = [0, 64], sizes = [1, 32], strides = [1, 1]} : vector<1x128xf32> to vector<1x32xf32>
    %75 = vector.extract_strided_slice %70 {offsets = [0, 96], sizes = [1, 32], strides = [1, 1]} : vector<1x128xf32> to vector<1x32xf32>
    %76 = arith.mulf %73, %55 : vector<1x32xf32>
    %77 = arith.mulf %72, %74 : vector<1x32xf32>
    %78 = arith.addf %76, %77 : vector<1x32xf32>
    %79 = math.tanh %78 : vector<1x32xf32>
    %80 = arith.mulf %75, %79 : vector<1x32xf32>
    %81 = arith.truncf %80 : vector<1x32xf32> to vector<1x32xbf16>
    %82 = arith.index_cast %c2_i32 : i32 to index
    %c0_27 = arith.constant 0 : index
    %83 = vector.load %arg17[%82, %c0_27] : memref<8x32xbf16, #tpu.memory_space<vmem>>, vector<1x32xbf16>
    tpu.vector_store %arg17[%82, %c0_27], %81 {strides = array<i32>} : memref<8x32xbf16, #tpu.memory_space<vmem>>, vector<1x32xbf16>,
    %c3_i32 = arith.constant 3 : i32
    %84 = arith.truncf %80 : vector<1x32xf32> to vector<1x32xbf16>
    %cst_28 = arith.constant dense<0.000000e+00> : vector<1x128xf32>
    %85 = tpu.matmul %84, %12, %cst_28 {dimension_numbers = #tpu.dot_dimension_numbers<[1], [0], [0], [1], [0, 0, 1, 1], [], []>} : vector<1x32xbf16>, vector<32x128xbf16>, vector<1x128xf32> -> vector<1x128xf32>
    %86 = arith.index_cast %c3_i32 : i32 to index
    %c0_29 = arith.constant 0 : index
    %87 = vector.load %arg18[%86, %c0_29] : memref<8x128xf32, #tpu.memory_space<vmem>>, vector<1x128xf32>
    %88 = arith.addf %87, %85 : vector<1x128xf32>
    %89 = arith.negf %88 : vector<1x128xf32>
    %90 = math.exp %89 : vector<1x128xf32>
    %cst_30 = arith.constant 1.000000e+00 : f32
    %91 = vector.broadcast %cst_30 : f32 to vector<1x128xf32>
    %92 = arith.addf %91, %90 : vector<1x128xf32>
    %93 = arith.divf %91, %92 : vector<1x128xf32>
    %94 = math.tanh %88 : vector<1x128xf32>
    %95 = vector.extract_strided_slice %93 {offsets = [0, 0], sizes = [1, 32], strides = [1, 1]} : vector<1x128xf32> to vector<1x32xf32>
    %96 = vector.extract_strided_slice %93 {offsets = [0, 32], sizes = [1, 32], strides = [1, 1]} : vector<1x128xf32> to vector<1x32xf32>
    %97 = vector.extract_strided_slice %94 {offsets = [0, 64], sizes = [1, 32], strides = [1, 1]} : vector<1x128xf32> to vector<1x32xf32>
    %98 = vector.extract_strided_slice %93 {offsets = [0, 96], sizes = [1, 32], strides = [1, 1]} : vector<1x128xf32> to vector<1x32xf32>
    %99 = arith.mulf %96, %78 : vector<1x32xf32>
    %100 = arith.mulf %95, %97 : vector<1x32xf32>
    %101 = arith.addf %99, %100 : vector<1x32xf32>
    %102 = math.tanh %101 : vector<1x32xf32>
    %103 = arith.mulf %98, %102 : vector<1x32xf32>
    %104 = arith.truncf %103 : vector<1x32xf32> to vector<1x32xbf16>
    %105 = arith.index_cast %c3_i32 : i32 to index
    %c0_31 = arith.constant 0 : index
    %106 = vector.load %arg17[%105, %c0_31] : memref<8x32xbf16, #tpu.memory_space<vmem>>, vector<1x32xbf16>
    tpu.vector_store %arg17[%105, %c0_31], %104 {strides = array<i32>} : memref<8x32xbf16, #tpu.memory_space<vmem>>, vector<1x32xbf16>,
    %c4_i32 = arith.constant 4 : i32
    %107 = arith.truncf %103 : vector<1x32xf32> to vector<1x32xbf16>
    %cst_32 = arith.constant dense<0.000000e+00> : vector<1x128xf32>
    %108 = tpu.matmul %107, %12, %cst_32 {dimension_numbers = #tpu.dot_dimension_numbers<[1], [0], [0], [1], [0, 0, 1, 1], [], []>} : vector<1x32xbf16>, vector<32x128xbf16>, vector<1x128xf32> -> vector<1x128xf32>
    %109 = arith.index_cast %c4_i32 : i32 to index
    %c0_33 = arith.constant 0 : index
    %110 = vector.load %arg18[%109, %c0_33] : memref<8x128xf32, #tpu.memory_space<vmem>>, vector<1x128xf32>
    %111 = arith.addf %110, %108 : vector<1x128xf32>
    %112 = arith.negf %111 : vector<1x128xf32>
    %113 = math.exp %112 : vector<1x128xf32>
    %cst_34 = arith.constant 1.000000e+00 : f32
    %114 = vector.broadcast %cst_34 : f32 to vector<1x128xf32>
    %115 = arith.addf %114, %113 : vector<1x128xf32>
    %116 = arith.divf %114, %115 : vector<1x128xf32>
    %117 = math.tanh %111 : vector<1x128xf32>
    %118 = vector.extract_strided_slice %116 {offsets = [0, 0], sizes = [1, 32], strides = [1, 1]} : vector<1x128xf32> to vector<1x32xf32>
    %119 = vector.extract_strided_slice %116 {offsets = [0, 32], sizes = [1, 32], strides = [1, 1]} : vector<1x128xf32> to vector<1x32xf32>
    %120 = vector.extract_strided_slice %117 {offsets = [0, 64], sizes = [1, 32], strides = [1, 1]} : vector<1x128xf32> to vector<1x32xf32>
    %121 = vector.extract_strided_slice %116 {offsets = [0, 96], sizes = [1, 32], strides = [1, 1]} : vector<1x128xf32> to vector<1x32xf32>
    %122 = arith.mulf %119, %101 : vector<1x32xf32>
    %123 = arith.mulf %118, %120 : vector<1x32xf32>
    %124 = arith.addf %122, %123 : vector<1x32xf32>
    %125 = math.tanh %124 : vector<1x32xf32>
    %126 = arith.mulf %121, %125 : vector<1x32xf32>
    %127 = arith.truncf %126 : vector<1x32xf32> to vector<1x32xbf16>
    %128 = arith.index_cast %c4_i32 : i32 to index
    %c0_35 = arith.constant 0 : index
    %129 = vector.load %arg17[%128, %c0_35] : memref<8x32xbf16, #tpu.memory_space<vmem>>, vector<1x32xbf16>
    tpu.vector_store %arg17[%128, %c0_35], %127 {strides = array<i32>} : memref<8x32xbf16, #tpu.memory_space<vmem>>, vector<1x32xbf16>,
    %c5_i32 = arith.constant 5 : i32
    %130 = arith.truncf %126 : vector<1x32xf32> to vector<1x32xbf16>
    %cst_36 = arith.constant dense<0.000000e+00> : vector<1x128xf32>
    %131 = tpu.matmul %130, %12, %cst_36 {dimension_numbers = #tpu.dot_dimension_numbers<[1], [0], [0], [1], [0, 0, 1, 1], [], []>} : vector<1x32xbf16>, vector<32x128xbf16>, vector<1x128xf32> -> vector<1x128xf32>
    %132 = arith.index_cast %c5_i32 : i32 to index
    %c0_37 = arith.constant 0 : index
    %133 = vector.load %arg18[%132, %c0_37] : memref<8x128xf32, #tpu.memory_space<vmem>>, vector<1x128xf32>
    %134 = arith.addf %133, %131 : vector<1x128xf32>
    %135 = arith.negf %134 : vector<1x128xf32>
    %136 = math.exp %135 : vector<1x128xf32>
    %cst_38 = arith.constant 1.000000e+00 : f32
    %137 = vector.broadcast %cst_38 : f32 to vector<1x128xf32>
    %138 = arith.addf %137, %136 : vector<1x128xf32>
    %139 = arith.divf %137, %138 : vector<1x128xf32>
    %140 = math.tanh %134 : vector<1x128xf32>
    %141 = vector.extract_strided_slice %139 {offsets = [0, 0], sizes = [1, 32], strides = [1, 1]} : vector<1x128xf32> to vector<1x32xf32>
    %142 = vector.extract_strided_slice %139 {offsets = [0, 32], sizes = [1, 32], strides = [1, 1]} : vector<1x128xf32> to vector<1x32xf32>
    %143 = vector.extract_strided_slice %140 {offsets = [0, 64], sizes = [1, 32], strides = [1, 1]} : vector<1x128xf32> to vector<1x32xf32>
    %144 = vector.extract_strided_slice %139 {offsets = [0, 96], sizes = [1, 32], strides = [1, 1]} : vector<1x128xf32> to vector<1x32xf32>
    %145 = arith.mulf %142, %124 : vector<1x32xf32>
    %146 = arith.mulf %141, %143 : vector<1x32xf32>
    %147 = arith.addf %145, %146 : vector<1x32xf32>
    %148 = math.tanh %147 : vector<1x32xf32>
    %149 = arith.mulf %144, %148 : vector<1x32xf32>
    %150 = arith.truncf %149 : vector<1x32xf32> to vector<1x32xbf16>
    %151 = arith.index_cast %c5_i32 : i32 to index
    %c0_39 = arith.constant 0 : index
    %152 = vector.load %arg17[%151, %c0_39] : memref<8x32xbf16, #tpu.memory_space<vmem>>, vector<1x32xbf16>
    tpu.vector_store %arg17[%151, %c0_39], %150 {strides = array<i32>} : memref<8x32xbf16, #tpu.memory_space<vmem>>, vector<1x32xbf16>,
    %c6_i32 = arith.constant 6 : i32
    %153 = arith.truncf %149 : vector<1x32xf32> to vector<1x32xbf16>
    %cst_40 = arith.constant dense<0.000000e+00> : vector<1x128xf32>
    %154 = tpu.matmul %153, %12, %cst_40 {dimension_numbers = #tpu.dot_dimension_numbers<[1], [0], [0], [1], [0, 0, 1, 1], [], []>} : vector<1x32xbf16>, vector<32x128xbf16>, vector<1x128xf32> -> vector<1x128xf32>
    %155 = arith.index_cast %c6_i32 : i32 to index
    %c0_41 = arith.constant 0 : index
    %156 = vector.load %arg18[%155, %c0_41] : memref<8x128xf32, #tpu.memory_space<vmem>>, vector<1x128xf32>
    %157 = arith.addf %156, %154 : vector<1x128xf32>
    %158 = arith.negf %157 : vector<1x128xf32>
    %159 = math.exp %158 : vector<1x128xf32>
    %cst_42 = arith.constant 1.000000e+00 : f32
    %160 = vector.broadcast %cst_42 : f32 to vector<1x128xf32>
    %161 = arith.addf %160, %159 : vector<1x128xf32>
    %162 = arith.divf %160, %161 : vector<1x128xf32>
    %163 = math.tanh %157 : vector<1x128xf32>
    %164 = vector.extract_strided_slice %162 {offsets = [0, 0], sizes = [1, 32], strides = [1, 1]} : vector<1x128xf32> to vector<1x32xf32>
    %165 = vector.extract_strided_slice %162 {offsets = [0, 32], sizes = [1, 32], strides = [1, 1]} : vector<1x128xf32> to vector<1x32xf32>
    %166 = vector.extract_strided_slice %163 {offsets = [0, 64], sizes = [1, 32], strides = [1, 1]} : vector<1x128xf32> to vector<1x32xf32>
    %167 = vector.extract_strided_slice %162 {offsets = [0, 96], sizes = [1, 32], strides = [1, 1]} : vector<1x128xf32> to vector<1x32xf32>
    %168 = arith.mulf %165, %147 : vector<1x32xf32>
    %169 = arith.mulf %164, %166 : vector<1x32xf32>
    %170 = arith.addf %168, %169 : vector<1x32xf32>
    %171 = math.tanh %170 : vector<1x32xf32>
    %172 = arith.mulf %167, %171 : vector<1x32xf32>
    %173 = arith.truncf %172 : vector<1x32xf32> to vector<1x32xbf16>
    %174 = arith.index_cast %c6_i32 : i32 to index
    %c0_43 = arith.constant 0 : index
    %175 = vector.load %arg17[%174, %c0_43] : memref<8x32xbf16, #tpu.memory_space<vmem>>, vector<1x32xbf16>
    tpu.vector_store %arg17[%174, %c0_43], %173 {strides = array<i32>} : memref<8x32xbf16, #tpu.memory_space<vmem>>, vector<1x32xbf16>,
    %c7_i32 = arith.constant 7 : i32
    %176 = arith.truncf %172 : vector<1x32xf32> to vector<1x32xbf16>
    %cst_44 = arith.constant dense<0.000000e+00> : vector<1x128xf32>
    %177 = tpu.matmul %176, %12, %cst_44 {dimension_numbers = #tpu.dot_dimension_numbers<[1], [0], [0], [1], [0, 0, 1, 1], [], []>} : vector<1x32xbf16>, vector<32x128xbf16>, vector<1x128xf32> -> vector<1x128xf32>
    %178 = arith.index_cast %c7_i32 : i32 to index
    %c0_45 = arith.constant 0 : index
    %179 = vector.load %arg18[%178, %c0_45] : memref<8x128xf32, #tpu.memory_space<vmem>>, vector<1x128xf32>
    %180 = arith.addf %179, %177 : vector<1x128xf32>
    %181 = arith.negf %180 : vector<1x128xf32>
    %182 = math.exp %181 : vector<1x128xf32>
    %cst_46 = arith.constant 1.000000e+00 : f32
    %183 = vector.broadcast %cst_46 : f32 to vector<1x128xf32>
    %184 = arith.addf %183, %182 : vector<1x128xf32>
    %185 = arith.divf %183, %184 : vector<1x128xf32>
    %186 = math.tanh %180 : vector<1x128xf32>
    %187 = vector.extract_strided_slice %185 {offsets = [0, 0], sizes = [1, 32], strides = [1, 1]} : vector<1x128xf32> to vector<1x32xf32>
    %188 = vector.extract_strided_slice %185 {offsets = [0, 32], sizes = [1, 32], strides = [1, 1]} : vector<1x128xf32> to vector<1x32xf32>
    %189 = vector.extract_strided_slice %186 {offsets = [0, 64], sizes = [1, 32], strides = [1, 1]} : vector<1x128xf32> to vector<1x32xf32>
    %190 = vector.extract_strided_slice %185 {offsets = [0, 96], sizes = [1, 32], strides = [1, 1]} : vector<1x128xf32> to vector<1x32xf32>
    %191 = arith.mulf %188, %170 : vector<1x32xf32>
    %192 = arith.mulf %187, %189 : vector<1x32xf32>
    %193 = arith.addf %191, %192 : vector<1x32xf32>
    %194 = math.tanh %193 : vector<1x32xf32>
    %195 = arith.mulf %190, %194 : vector<1x32xf32>
    %196 = arith.truncf %195 : vector<1x32xf32> to vector<1x32xbf16>
    %197 = arith.index_cast %c7_i32 : i32 to index
    %c0_47 = arith.constant 0 : index
    %198 = vector.load %arg17[%197, %c0_47] : memref<8x32xbf16, #tpu.memory_space<vmem>>, vector<1x32xbf16>
    tpu.vector_store %arg17[%197, %c0_47], %196 {strides = array<i32>} : memref<8x32xbf16, #tpu.memory_space<vmem>>, vector<1x32xbf16>,
    %c8_i32 = arith.constant 8 : i32
    %c0_48 = arith.constant 0 : index
    %c0_49 = arith.constant 0 : index
    %199 = vector.load %arg17[%c0_48, %c0_49] : memref<8x32xbf16, #tpu.memory_space<vmem>>, vector<8x32xbf16>
    %c0_50 = arith.constant 0 : index
    %c0_51 = arith.constant 0 : index
    %200 = vector.load %arg7[%c0_50, %c0_51] : memref<32x128xbf16, #tpu.memory_space<vmem>>, vector<32x128xbf16>
    %cst_52 = arith.constant dense<0.000000e+00> : vector<8x128xf32>
    %201 = tpu.matmul %199, %200, %cst_52 {dimension_numbers = #tpu.dot_dimension_numbers<[1], [0], [0], [1], [0, 0, 1, 1], [], []>} : vector<8x32xbf16>, vector<32x128xbf16>, vector<8x128xf32> -> vector<8x128xf32>
    %c0_53 = arith.constant 0 : index
    %c0_54 = arith.constant 0 : index
    %202 = vector.load %arg9[%c0_53, %c0_54] : memref<1x128xf32, #tpu.memory_space<vmem>>, vector<1x128xf32>
    %203 = vector.broadcast %202 : vector<1x128xf32> to vector<8x128xf32>
    %204 = arith.addf %201, %203 : vector<8x128xf32>
    %c0_55 = arith.constant 0 : index
    %c0_56 = arith.constant 0 : index
    %205 = vector.load %arg18[%c0_55, %c0_56] : memref<8x128xf32, #tpu.memory_space<vmem>>, vector<8x128xf32>
    tpu.vector_store %arg18[%c0_55, %c0_56], %204 {strides = array<i32>} : memref<8x128xf32, #tpu.memory_space<vmem>>, vector<8x128xf32>,
    %c0_57 = arith.constant 0 : index
    %c0_58 = arith.constant 0 : index
    %206 = vector.load %arg8[%c0_57, %c0_58] : memref<32x128xbf16, #tpu.memory_space<vmem>>, vector<32x128xbf16>
    %207 = vector.extract_strided_slice %1 {offsets = [1, 0], sizes = [1, 32], strides = [1, 1]} : vector<2x32xf32> to vector<1x32xf32>
    %208 = vector.extract_strided_slice %3 {offsets = [1, 0], sizes = [1, 32], strides = [1, 1]} : vector<2x32xf32> to vector<1x32xf32>
    %c0_i32_59 = arith.constant 0 : i32
    %209 = arith.truncf %207 : vector<1x32xf32> to vector<1x32xbf16>
    %cst_60 = arith.constant dense<0.000000e+00> : vector<1x128xf32>
    %210 = tpu.matmul %209, %206, %cst_60 {dimension_numbers = #tpu.dot_dimension_numbers<[1], [0], [0], [1], [0, 0, 1, 1], [], []>} : vector<1x32xbf16>, vector<32x128xbf16>, vector<1x128xf32> -> vector<1x128xf32>
    %211 = arith.index_cast %c0_i32_59 : i32 to index
    %c0_61 = arith.constant 0 : index
    %212 = vector.load %arg18[%211, %c0_61] : memref<8x128xf32, #tpu.memory_space<vmem>>, vector<1x128xf32>
    %213 = arith.addf %212, %210 : vector<1x128xf32>
    %214 = arith.negf %213 : vector<1x128xf32>
    %215 = math.exp %214 : vector<1x128xf32>
    %cst_62 = arith.constant 1.000000e+00 : f32
    %216 = vector.broadcast %cst_62 : f32 to vector<1x128xf32>
    %217 = arith.addf %216, %215 : vector<1x128xf32>
    %218 = arith.divf %216, %217 : vector<1x128xf32>
    %219 = math.tanh %213 : vector<1x128xf32>
    %220 = vector.extract_strided_slice %218 {offsets = [0, 0], sizes = [1, 32], strides = [1, 1]} : vector<1x128xf32> to vector<1x32xf32>
    %221 = vector.extract_strided_slice %218 {offsets = [0, 32], sizes = [1, 32], strides = [1, 1]} : vector<1x128xf32> to vector<1x32xf32>
    %222 = vector.extract_strided_slice %219 {offsets = [0, 64], sizes = [1, 32], strides = [1, 1]} : vector<1x128xf32> to vector<1x32xf32>
    %223 = vector.extract_strided_slice %218 {offsets = [0, 96], sizes = [1, 32], strides = [1, 1]} : vector<1x128xf32> to vector<1x32xf32>
    %224 = arith.mulf %221, %208 : vector<1x32xf32>
    %225 = arith.mulf %220, %222 : vector<1x32xf32>
    %226 = arith.addf %224, %225 : vector<1x32xf32>
    %227 = math.tanh %226 : vector<1x32xf32>
    %228 = arith.mulf %223, %227 : vector<1x32xf32>
    %229 = arith.truncf %228 : vector<1x32xf32> to vector<1x32xbf16>
    %230 = arith.index_cast %c0_i32_59 : i32 to index
    %c0_63 = arith.constant 0 : index
    %231 = vector.load %arg17[%230, %c0_63] : memref<8x32xbf16, #tpu.memory_space<vmem>>, vector<1x32xbf16>
    tpu.vector_store %arg17[%230, %c0_63], %229 {strides = array<i32>} : memref<8x32xbf16, #tpu.memory_space<vmem>>, vector<1x32xbf16>,
    %c1_i32_64 = arith.constant 1 : i32
    %232 = arith.truncf %228 : vector<1x32xf32> to vector<1x32xbf16>
    %cst_65 = arith.constant dense<0.000000e+00> : vector<1x128xf32>
    %233 = tpu.matmul %232, %206, %cst_65 {dimension_numbers = #tpu.dot_dimension_numbers<[1], [0], [0], [1], [0, 0, 1, 1], [], []>} : vector<1x32xbf16>, vector<32x128xbf16>, vector<1x128xf32> -> vector<1x128xf32>
    %234 = arith.index_cast %c1_i32_64 : i32 to index
    %c0_66 = arith.constant 0 : index
    %235 = vector.load %arg18[%234, %c0_66] : memref<8x128xf32, #tpu.memory_space<vmem>>, vector<1x128xf32>
    %236 = arith.addf %235, %233 : vector<1x128xf32>
    %237 = arith.negf %236 : vector<1x128xf32>
    %238 = math.exp %237 : vector<1x128xf32>
    %cst_67 = arith.constant 1.000000e+00 : f32
    %239 = vector.broadcast %cst_67 : f32 to vector<1x128xf32>
    %240 = arith.addf %239, %238 : vector<1x128xf32>
    %241 = arith.divf %239, %240 : vector<1x128xf32>
    %242 = math.tanh %236 : vector<1x128xf32>
    %243 = vector.extract_strided_slice %241 {offsets = [0, 0], sizes = [1, 32], strides = [1, 1]} : vector<1x128xf32> to vector<1x32xf32>
    %244 = vector.extract_strided_slice %241 {offsets = [0, 32], sizes = [1, 32], strides = [1, 1]} : vector<1x128xf32> to vector<1x32xf32>
    %245 = vector.extract_strided_slice %242 {offsets = [0, 64], sizes = [1, 32], strides = [1, 1]} : vector<1x128xf32> to vector<1x32xf32>
    %246 = vector.extract_strided_slice %241 {offsets = [0, 96], sizes = [1, 32], strides = [1, 1]} : vector<1x128xf32> to vector<1x32xf32>
    %247 = arith.mulf %244, %226 : vector<1x32xf32>
    %248 = arith.mulf %243, %245 : vector<1x32xf32>
    %249 = arith.addf %247, %248 : vector<1x32xf32>
    %250 = math.tanh %249 : vector<1x32xf32>
    %251 = arith.mulf %246, %250 : vector<1x32xf32>
    %252 = arith.truncf %251 : vector<1x32xf32> to vector<1x32xbf16>
    %253 = arith.index_cast %c1_i32_64 : i32 to index
    %c0_68 = arith.constant 0 : index
    %254 = vector.load %arg17[%253, %c0_68] : memref<8x32xbf16, #tpu.memory_space<vmem>>, vector<1x32xbf16>
    tpu.vector_store %arg17[%253, %c0_68], %252 {strides = array<i32>} : memref<8x32xbf16, #tpu.memory_space<vmem>>, vector<1x32xbf16>,
    %c2_i32_69 = arith.constant 2 : i32
    %255 = arith.truncf %251 : vector<1x32xf32> to vector<1x32xbf16>
    %cst_70 = arith.constant dense<0.000000e+00> : vector<1x128xf32>
    %256 = tpu.matmul %255, %206, %cst_70 {dimension_numbers = #tpu.dot_dimension_numbers<[1], [0], [0], [1], [0, 0, 1, 1], [], []>} : vector<1x32xbf16>, vector<32x128xbf16>, vector<1x128xf32> -> vector<1x128xf32>
    %257 = arith.index_cast %c2_i32_69 : i32 to index
    %c0_71 = arith.constant 0 : index
    %258 = vector.load %arg18[%257, %c0_71] : memref<8x128xf32, #tpu.memory_space<vmem>>, vector<1x128xf32>
    %259 = arith.addf %258, %256 : vector<1x128xf32>
    %260 = arith.negf %259 : vector<1x128xf32>
    %261 = math.exp %260 : vector<1x128xf32>
    %cst_72 = arith.constant 1.000000e+00 : f32
    %262 = vector.broadcast %cst_72 : f32 to vector<1x128xf32>
    %263 = arith.addf %262, %261 : vector<1x128xf32>
    %264 = arith.divf %262, %263 : vector<1x128xf32>
    %265 = math.tanh %259 : vector<1x128xf32>
    %266 = vector.extract_strided_slice %264 {offsets = [0, 0], sizes = [1, 32], strides = [1, 1]} : vector<1x128xf32> to vector<1x32xf32>
    %267 = vector.extract_strided_slice %264 {offsets = [0, 32], sizes = [1, 32], strides = [1, 1]} : vector<1x128xf32> to vector<1x32xf32>
    %268 = vector.extract_strided_slice %265 {offsets = [0, 64], sizes = [1, 32], strides = [1, 1]} : vector<1x128xf32> to vector<1x32xf32>
    %269 = vector.extract_strided_slice %264 {offsets = [0, 96], sizes = [1, 32], strides = [1, 1]} : vector<1x128xf32> to vector<1x32xf32>
    %270 = arith.mulf %267, %249 : vector<1x32xf32>
    %271 = arith.mulf %266, %268 : vector<1x32xf32>
    %272 = arith.addf %270, %271 : vector<1x32xf32>
    %273 = math.tanh %272 : vector<1x32xf32>
    %274 = arith.mulf %269, %273 : vector<1x32xf32>
    %275 = arith.truncf %274 : vector<1x32xf32> to vector<1x32xbf16>
    %276 = arith.index_cast %c2_i32_69 : i32 to index
    %c0_73 = arith.constant 0 : index
    %277 = vector.load %arg17[%276, %c0_73] : memref<8x32xbf16, #tpu.memory_space<vmem>>, vector<1x32xbf16>
    tpu.vector_store %arg17[%276, %c0_73], %275 {strides = array<i32>} : memref<8x32xbf16, #tpu.memory_space<vmem>>, vector<1x32xbf16>,
    %c3_i32_74 = arith.constant 3 : i32
    %278 = arith.truncf %274 : vector<1x32xf32> to vector<1x32xbf16>
    %cst_75 = arith.constant dense<0.000000e+00> : vector<1x128xf32>
    %279 = tpu.matmul %278, %206, %cst_75 {dimension_numbers = #tpu.dot_dimension_numbers<[1], [0], [0], [1], [0, 0, 1, 1], [], []>} : vector<1x32xbf16>, vector<32x128xbf16>, vector<1x128xf32> -> vector<1x128xf32>
    %280 = arith.index_cast %c3_i32_74 : i32 to index
    %c0_76 = arith.constant 0 : index
    %281 = vector.load %arg18[%280, %c0_76] : memref<8x128xf32, #tpu.memory_space<vmem>>, vector<1x128xf32>
    %282 = arith.addf %281, %279 : vector<1x128xf32>
    %283 = arith.negf %282 : vector<1x128xf32>
    %284 = math.exp %283 : vector<1x128xf32>
    %cst_77 = arith.constant 1.000000e+00 : f32
    %285 = vector.broadcast %cst_77 : f32 to vector<1x128xf32>
    %286 = arith.addf %285, %284 : vector<1x128xf32>
    %287 = arith.divf %285, %286 : vector<1x128xf32>
    %288 = math.tanh %282 : vector<1x128xf32>
    %289 = vector.extract_strided_slice %287 {offsets = [0, 0], sizes = [1, 32], strides = [1, 1]} : vector<1x128xf32> to vector<1x32xf32>
    %290 = vector.extract_strided_slice %287 {offsets = [0, 32], sizes = [1, 32], strides = [1, 1]} : vector<1x128xf32> to vector<1x32xf32>
    %291 = vector.extract_strided_slice %288 {offsets = [0, 64], sizes = [1, 32], strides = [1, 1]} : vector<1x128xf32> to vector<1x32xf32>
    %292 = vector.extract_strided_slice %287 {offsets = [0, 96], sizes = [1, 32], strides = [1, 1]} : vector<1x128xf32> to vector<1x32xf32>
    %293 = arith.mulf %290, %272 : vector<1x32xf32>
    %294 = arith.mulf %289, %291 : vector<1x32xf32>
    %295 = arith.addf %293, %294 : vector<1x32xf32>
    %296 = math.tanh %295 : vector<1x32xf32>
    %297 = arith.mulf %292, %296 : vector<1x32xf32>
    %298 = arith.truncf %297 : vector<1x32xf32> to vector<1x32xbf16>
    %299 = arith.index_cast %c3_i32_74 : i32 to index
    %c0_78 = arith.constant 0 : index
    %300 = vector.load %arg17[%299, %c0_78] : memref<8x32xbf16, #tpu.memory_space<vmem>>, vector<1x32xbf16>
    tpu.vector_store %arg17[%299, %c0_78], %298 {strides = array<i32>} : memref<8x32xbf16, #tpu.memory_space<vmem>>, vector<1x32xbf16>,
    %c4_i32_79 = arith.constant 4 : i32
    %301 = arith.truncf %297 : vector<1x32xf32> to vector<1x32xbf16>
    %cst_80 = arith.constant dense<0.000000e+00> : vector<1x128xf32>
    %302 = tpu.matmul %301, %206, %cst_80 {dimension_numbers = #tpu.dot_dimension_numbers<[1], [0], [0], [1], [0, 0, 1, 1], [], []>} : vector<1x32xbf16>, vector<32x128xbf16>, vector<1x128xf32> -> vector<1x128xf32>
    %303 = arith.index_cast %c4_i32_79 : i32 to index
    %c0_81 = arith.constant 0 : index
    %304 = vector.load %arg18[%303, %c0_81] : memref<8x128xf32, #tpu.memory_space<vmem>>, vector<1x128xf32>
    %305 = arith.addf %304, %302 : vector<1x128xf32>
    %306 = arith.negf %305 : vector<1x128xf32>
    %307 = math.exp %306 : vector<1x128xf32>
    %cst_82 = arith.constant 1.000000e+00 : f32
    %308 = vector.broadcast %cst_82 : f32 to vector<1x128xf32>
    %309 = arith.addf %308, %307 : vector<1x128xf32>
    %310 = arith.divf %308, %309 : vector<1x128xf32>
    %311 = math.tanh %305 : vector<1x128xf32>
    %312 = vector.extract_strided_slice %310 {offsets = [0, 0], sizes = [1, 32], strides = [1, 1]} : vector<1x128xf32> to vector<1x32xf32>
    %313 = vector.extract_strided_slice %310 {offsets = [0, 32], sizes = [1, 32], strides = [1, 1]} : vector<1x128xf32> to vector<1x32xf32>
    %314 = vector.extract_strided_slice %311 {offsets = [0, 64], sizes = [1, 32], strides = [1, 1]} : vector<1x128xf32> to vector<1x32xf32>
    %315 = vector.extract_strided_slice %310 {offsets = [0, 96], sizes = [1, 32], strides = [1, 1]} : vector<1x128xf32> to vector<1x32xf32>
    %316 = arith.mulf %313, %295 : vector<1x32xf32>
    %317 = arith.mulf %312, %314 : vector<1x32xf32>
    %318 = arith.addf %316, %317 : vector<1x32xf32>
    %319 = math.tanh %318 : vector<1x32xf32>
    %320 = arith.mulf %315, %319 : vector<1x32xf32>
    %321 = arith.truncf %320 : vector<1x32xf32> to vector<1x32xbf16>
    %322 = arith.index_cast %c4_i32_79 : i32 to index
    %c0_83 = arith.constant 0 : index
    %323 = vector.load %arg17[%322, %c0_83] : memref<8x32xbf16, #tpu.memory_space<vmem>>, vector<1x32xbf16>
    tpu.vector_store %arg17[%322, %c0_83], %321 {strides = array<i32>} : memref<8x32xbf16, #tpu.memory_space<vmem>>, vector<1x32xbf16>,
    %c5_i32_84 = arith.constant 5 : i32
    %324 = arith.truncf %320 : vector<1x32xf32> to vector<1x32xbf16>
    %cst_85 = arith.constant dense<0.000000e+00> : vector<1x128xf32>
    %325 = tpu.matmul %324, %206, %cst_85 {dimension_numbers = #tpu.dot_dimension_numbers<[1], [0], [0], [1], [0, 0, 1, 1], [], []>} : vector<1x32xbf16>, vector<32x128xbf16>, vector<1x128xf32> -> vector<1x128xf32>
    %326 = arith.index_cast %c5_i32_84 : i32 to index
    %c0_86 = arith.constant 0 : index
    %327 = vector.load %arg18[%326, %c0_86] : memref<8x128xf32, #tpu.memory_space<vmem>>, vector<1x128xf32>
    %328 = arith.addf %327, %325 : vector<1x128xf32>
    %329 = arith.negf %328 : vector<1x128xf32>
    %330 = math.exp %329 : vector<1x128xf32>
    %cst_87 = arith.constant 1.000000e+00 : f32
    %331 = vector.broadcast %cst_87 : f32 to vector<1x128xf32>
    %332 = arith.addf %331, %330 : vector<1x128xf32>
    %333 = arith.divf %331, %332 : vector<1x128xf32>
    %334 = math.tanh %328 : vector<1x128xf32>
    %335 = vector.extract_strided_slice %333 {offsets = [0, 0], sizes = [1, 32], strides = [1, 1]} : vector<1x128xf32> to vector<1x32xf32>
    %336 = vector.extract_strided_slice %333 {offsets = [0, 32], sizes = [1, 32], strides = [1, 1]} : vector<1x128xf32> to vector<1x32xf32>
    %337 = vector.extract_strided_slice %334 {offsets = [0, 64], sizes = [1, 32], strides = [1, 1]} : vector<1x128xf32> to vector<1x32xf32>
    %338 = vector.extract_strided_slice %333 {offsets = [0, 96], sizes = [1, 32], strides = [1, 1]} : vector<1x128xf32> to vector<1x32xf32>
    %339 = arith.mulf %336, %318 : vector<1x32xf32>
    %340 = arith.mulf %335, %337 : vector<1x32xf32>
    %341 = arith.addf %339, %340 : vector<1x32xf32>
    %342 = math.tanh %341 : vector<1x32xf32>
    %343 = arith.mulf %338, %342 : vector<1x32xf32>
    %344 = arith.truncf %343 : vector<1x32xf32> to vector<1x32xbf16>
    %345 = arith.index_cast %c5_i32_84 : i32 to index
    %c0_88 = arith.constant 0 : index
    %346 = vector.load %arg17[%345, %c0_88] : memref<8x32xbf16, #tpu.memory_space<vmem>>, vector<1x32xbf16>
    tpu.vector_store %arg17[%345, %c0_88], %344 {strides = array<i32>} : memref<8x32xbf16, #tpu.memory_space<vmem>>, vector<1x32xbf16>,
    %c6_i32_89 = arith.constant 6 : i32
    %347 = arith.truncf %343 : vector<1x32xf32> to vector<1x32xbf16>
    %cst_90 = arith.constant dense<0.000000e+00> : vector<1x128xf32>
    %348 = tpu.matmul %347, %206, %cst_90 {dimension_numbers = #tpu.dot_dimension_numbers<[1], [0], [0], [1], [0, 0, 1, 1], [], []>} : vector<1x32xbf16>, vector<32x128xbf16>, vector<1x128xf32> -> vector<1x128xf32>
    %349 = arith.index_cast %c6_i32_89 : i32 to index
    %c0_91 = arith.constant 0 : index
    %350 = vector.load %arg18[%349, %c0_91] : memref<8x128xf32, #tpu.memory_space<vmem>>, vector<1x128xf32>
    %351 = arith.addf %350, %348 : vector<1x128xf32>
    %352 = arith.negf %351 : vector<1x128xf32>
    %353 = math.exp %352 : vector<1x128xf32>
    %cst_92 = arith.constant 1.000000e+00 : f32
    %354 = vector.broadcast %cst_92 : f32 to vector<1x128xf32>
    %355 = arith.addf %354, %353 : vector<1x128xf32>
    %356 = arith.divf %354, %355 : vector<1x128xf32>
    %357 = math.tanh %351 : vector<1x128xf32>
    %358 = vector.extract_strided_slice %356 {offsets = [0, 0], sizes = [1, 32], strides = [1, 1]} : vector<1x128xf32> to vector<1x32xf32>
    %359 = vector.extract_strided_slice %356 {offsets = [0, 32], sizes = [1, 32], strides = [1, 1]} : vector<1x128xf32> to vector<1x32xf32>
    %360 = vector.extract_strided_slice %357 {offsets = [0, 64], sizes = [1, 32], strides = [1, 1]} : vector<1x128xf32> to vector<1x32xf32>
    %361 = vector.extract_strided_slice %356 {offsets = [0, 96], sizes = [1, 32], strides = [1, 1]} : vector<1x128xf32> to vector<1x32xf32>
    %362 = arith.mulf %359, %341 : vector<1x32xf32>
    %363 = arith.mulf %358, %360 : vector<1x32xf32>
    %364 = arith.addf %362, %363 : vector<1x32xf32>
    %365 = math.tanh %364 : vector<1x32xf32>
    %366 = arith.mulf %361, %365 : vector<1x32xf32>
    %367 = arith.truncf %366 : vector<1x32xf32> to vector<1x32xbf16>
    %368 = arith.index_cast %c6_i32_89 : i32 to index
    %c0_93 = arith.constant 0 : index
    %369 = vector.load %arg17[%368, %c0_93] : memref<8x32xbf16, #tpu.memory_space<vmem>>, vector<1x32xbf16>
    tpu.vector_store %arg17[%368, %c0_93], %367 {strides = array<i32>} : memref<8x32xbf16, #tpu.memory_space<vmem>>, vector<1x32xbf16>,
    %c7_i32_94 = arith.constant 7 : i32
    %370 = arith.truncf %366 : vector<1x32xf32> to vector<1x32xbf16>
    %cst_95 = arith.constant dense<0.000000e+00> : vector<1x128xf32>
    %371 = tpu.matmul %370, %206, %cst_95 {dimension_numbers = #tpu.dot_dimension_numbers<[1], [0], [0], [1], [0, 0, 1, 1], [], []>} : vector<1x32xbf16>, vector<32x128xbf16>, vector<1x128xf32> -> vector<1x128xf32>
    %372 = arith.index_cast %c7_i32_94 : i32 to index
    %c0_96 = arith.constant 0 : index
    %373 = vector.load %arg18[%372, %c0_96] : memref<8x128xf32, #tpu.memory_space<vmem>>, vector<1x128xf32>
    %374 = arith.addf %373, %371 : vector<1x128xf32>
    %375 = arith.negf %374 : vector<1x128xf32>
    %376 = math.exp %375 : vector<1x128xf32>
    %cst_97 = arith.constant 1.000000e+00 : f32
    %377 = vector.broadcast %cst_97 : f32 to vector<1x128xf32>
    %378 = arith.addf %377, %376 : vector<1x128xf32>
    %379 = arith.divf %377, %378 : vector<1x128xf32>
    %380 = math.tanh %374 : vector<1x128xf32>
    %381 = vector.extract_strided_slice %379 {offsets = [0, 0], sizes = [1, 32], strides = [1, 1]} : vector<1x128xf32> to vector<1x32xf32>
    %382 = vector.extract_strided_slice %379 {offsets = [0, 32], sizes = [1, 32], strides = [1, 1]} : vector<1x128xf32> to vector<1x32xf32>
    %383 = vector.extract_strided_slice %380 {offsets = [0, 64], sizes = [1, 32], strides = [1, 1]} : vector<1x128xf32> to vector<1x32xf32>
    %384 = vector.extract_strided_slice %379 {offsets = [0, 96], sizes = [1, 32], strides = [1, 1]} : vector<1x128xf32> to vector<1x32xf32>
    %385 = arith.mulf %382, %364 : vector<1x32xf32>
    %386 = arith.mulf %381, %383 : vector<1x32xf32>
    %387 = arith.addf %385, %386 : vector<1x32xf32>
    %388 = math.tanh %387 : vector<1x32xf32>
    %389 = arith.mulf %384, %388 : vector<1x32xf32>
    %390 = arith.truncf %389 : vector<1x32xf32> to vector<1x32xbf16>
    %391 = arith.index_cast %c7_i32_94 : i32 to index
    %c0_98 = arith.constant 0 : index
    %392 = vector.load %arg17[%391, %c0_98] : memref<8x32xbf16, #tpu.memory_space<vmem>>, vector<1x32xbf16>
    tpu.vector_store %arg17[%391, %c0_98], %390 {strides = array<i32>} : memref<8x32xbf16, #tpu.memory_space<vmem>>, vector<1x32xbf16>,
    %c8_i32_99 = arith.constant 8 : i32
    %393 = tpu.concatenate %195, %389 in 0 : vector<1x32xf32>, vector<1x32xf32> -> vector<2x32xf32>
    %c0_100 = arith.constant 0 : index
    %c0_101 = arith.constant 0 : index
    %c0_102 = arith.constant 0 : index
    %394 = vector.load %arg15[%c0_100, %c0_101, %c0_102] : memref<1x2x32xf32, #tpu.memory_space<vmem>>, vector<1x2x32xf32>
    %395 = vector.shape_cast %394 : vector<1x2x32xf32> to vector<2x32xf32>
    %396 = vector.shape_cast %393 : vector<2x32xf32> to vector<1x2x32xf32>
    tpu.vector_store %arg15[%c0_100, %c0_101, %c0_102], %396 {strides = array<i32>} : memref<1x2x32xf32, #tpu.memory_space<vmem>>, vector<1x2x32xf32>,
    %397 = tpu.concatenate %193, %387 in 0 : vector<1x32xf32>, vector<1x32xf32> -> vector<2x32xf32>
    %c0_103 = arith.constant 0 : index
    %c0_104 = arith.constant 0 : index
    %c0_105 = arith.constant 0 : index
    %398 = vector.load %arg16[%c0_103, %c0_104, %c0_105] : memref<1x2x32xf32, #tpu.memory_space<vmem>>, vector<1x2x32xf32>
    %399 = vector.shape_cast %398 : vector<1x2x32xf32> to vector<2x32xf32>
    %400 = vector.shape_cast %397 : vector<2x32xf32> to vector<1x2x32xf32>
    tpu.vector_store %arg16[%c0_103, %c0_104, %c0_105], %400 {strides = array<i32>} : memref<1x2x32xf32, #tpu.memory_space<vmem>>, vector<1x2x32xf32>,
    %c0_106 = arith.constant 0 : index
    %c0_107 = arith.constant 0 : index
    %401 = vector.load %arg17[%c0_106, %c0_107] : memref<8x32xbf16, #tpu.memory_space<vmem>>, vector<8x32xbf16>
    %c0_108 = arith.constant 0 : index
    %c0_109 = arith.constant 0 : index
    %402 = vector.load %arg10[%c0_108, %c0_109] : memref<32x32xbf16, #tpu.memory_space<vmem>>, vector<32x32xbf16>
    %cst_110 = arith.constant dense<0.000000e+00> : vector<8x32xf32>
    %403 = tpu.matmul %401, %402, %cst_110 {dimension_numbers = #tpu.dot_dimension_numbers<[1], [0], [0], [1], [0, 0, 1, 1], [], []>} : vector<8x32xbf16>, vector<32x32xbf16>, vector<8x32xf32> -> vector<8x32xf32>
    %c0_111 = arith.constant 0 : index
    %c0_112 = arith.constant 0 : index
    %404 = vector.load %arg11[%c0_111, %c0_112] : memref<1x32xf32, #tpu.memory_space<vmem>>, vector<1x32xf32>
    %405 = vector.broadcast %404 : vector<1x32xf32> to vector<8x32xf32>
    %406 = arith.addf %403, %405 : vector<8x32xf32>
    %cst_113 = arith.constant 0.000000e+00 : f32
    %407 = vector.broadcast %cst_113 : f32 to vector<8x32xf32>
    %408 = arith.maximumf %406, %407 : vector<8x32xf32>
    %409 = arith.truncf %408 : vector<8x32xf32> to vector<8x32xbf16>
    %c0_114 = arith.constant 0 : index
    %c0_115 = arith.constant 0 : index
    %410 = vector.load %arg12[%c0_114, %c0_115] : memref<32x128xbf16, #tpu.memory_space<vmem>>, vector<32x128xbf16>
    %cst_116 = arith.constant dense<0.000000e+00> : vector<8x128xf32>
    %411 = tpu.matmul %409, %410, %cst_116 {dimension_numbers = #tpu.dot_dimension_numbers<[1], [0], [0], [1], [0, 0, 1, 1], [], []>} : vector<8x32xbf16>, vector<32x128xbf16>, vector<8x128xf32> -> vector<8x128xf32>
    %c0_117 = arith.constant 0 : index
    %c0_118 = arith.constant 0 : index
    %412 = vector.load %arg13[%c0_117, %c0_118] : memref<1x128xf32, #tpu.memory_space<vmem>>, vector<1x128xf32>
    %413 = vector.broadcast %412 : vector<1x128xf32> to vector<8x128xf32>
    %414 = arith.addf %411, %413 : vector<8x128xf32>
    %c0_119 = arith.constant 0 : index
    %c0_120 = arith.constant 0 : index
    %c0_121 = arith.constant 0 : index
    %415 = vector.load %arg14[%c0_119, %c0_120, %c0_121] : memref<1x8x128xf32, #tpu.memory_space<vmem>>, vector<1x8x128xf32>
    %416 = vector.shape_cast %415 : vector<1x8x128xf32> to vector<8x128xf32>
    %417 = vector.shape_cast %414 : vector<8x128xf32> to vector<1x8x128xf32>
    tpu.vector_store %arg14[%c0_119, %c0_120, %c0_121], %417 {strides = array<i32>} : memref<1x8x128xf32, #tpu.memory_space<vmem>>, vector<1x8x128xf32>,
    return
  }
  func.func @transform_0(%arg0: i32) -> (i32, i32, i32) {
    %c0_i32 = arith.constant 0 : i32
    %c0_i32_0 = arith.constant 0 : i32
    %c0_i32_1 = arith.constant 0 : i32
    return %arg0, %c0_i32, %c0_i32_0 : i32, i32, i32
  }
  func.func @transform_1(%arg0: i32) -> (i32, i32, i32) {
    %c0_i32 = arith.constant 0 : i32
    %c0_i32_0 = arith.constant 0 : i32
    %c0_i32_1 = arith.constant 0 : i32
    return %arg0, %c0_i32, %c0_i32_0 : i32, i32, i32
  }
  func.func @transform_2(%arg0: i32) -> (i32, i32, i32) {
    %c0_i32 = arith.constant 0 : i32
    %c0_i32_0 = arith.constant 0 : i32
    %c0_i32_1 = arith.constant 0 : i32
    return %arg0, %c0_i32, %c0_i32_0 : i32, i32, i32
  }
  func.func @transform_3(%arg0: i32) -> (i32, i32) {
    %c0_i32 = arith.constant 0 : i32
    %c0_i32_0 = arith.constant 0 : i32
    %c0_i32_1 = arith.constant 0 : i32
    return %c0_i32, %c0_i32_0 : i32, i32
  }
  func.func @transform_4(%arg0: i32) -> (i32, i32) {
    %c0_i32 = arith.constant 0 : i32
    %c0_i32_0 = arith.constant 0 : i32
    %c0_i32_1 = arith.constant 0 : i32
    return %c0_i32, %c0_i32_0 : i32, i32
  }
  func.func @transform_5(%arg0: i32) -> (i32, i32) {
    %c0_i32 = arith.constant 0 : i32
    %c0_i32_0 = arith.constant 0 : i32
    %c0_i32_1 = arith.constant 0 : i32
    return %c0_i32, %c0_i32_0 : i32, i32
  }
  func.func @transform_6(%arg0: i32) -> (i32, i32) {
    %c0_i32 = arith.constant 0 : i32
    %c0_i32_0 = arith.constant 0 : i32
    %c0_i32_1 = arith.constant 0 : i32
    return %c0_i32, %c0_i32_0 : i32, i32
  }
  func.func @transform_7(%arg0: i32) -> (i32, i32) {
    %c0_i32 = arith.constant 0 : i32
    %c0_i32_0 = arith.constant 0 : i32
    %c0_i32_1 = arith.constant 0 : i32
    return %c0_i32, %c0_i32_0 : i32, i32
  }
  func.func @transform_8(%arg0: i32) -> (i32, i32) {
    %c0_i32 = arith.constant 0 : i32
    %c0_i32_0 = arith.constant 0 : i32
    %c0_i32_1 = arith.constant 0 : i32
    return %c0_i32, %c0_i32_0 : i32, i32
  }
  func.func @transform_9(%arg0: i32) -> (i32, i32) {
    %c0_i32 = arith.constant 0 : i32
    %c0_i32_0 = arith.constant 0 : i32
    %c0_i32_1 = arith.constant 0 : i32
    return %c0_i32, %c0_i32_0 : i32, i32
  }
  func.func @transform_10(%arg0: i32) -> (i32, i32) {
    %c0_i32 = arith.constant 0 : i32
    %c0_i32_0 = arith.constant 0 : i32
    %c0_i32_1 = arith.constant 0 : i32
    return %c0_i32, %c0_i32_0 : i32, i32
  }
  func.func @transform_11(%arg0: i32) -> (i32, i32) {
    %c0_i32 = arith.constant 0 : i32
    %c0_i32_0 = arith.constant 0 : i32
    %c0_i32_1 = arith.constant 0 : i32
    return %c0_i32, %c0_i32_0 : i32, i32
  }
  func.func @transform_12(%arg0: i32) -> (i32, i32) {
    %c0_i32 = arith.constant 0 : i32
    %c0_i32_0 = arith.constant 0 : i32
    %c0_i32_1 = arith.constant 0 : i32
    return %c0_i32, %c0_i32_0 : i32, i32
  }
  func.func @transform_13(%arg0: i32) -> (i32, i32, i32) {
    %c0_i32 = arith.constant 0 : i32
    %c0_i32_0 = arith.constant 0 : i32
    %c0_i32_1 = arith.constant 0 : i32
    return %arg0, %c0_i32, %c0_i32_0 : i32, i32, i32
  }
  func.func @transform_14(%arg0: i32) -> (i32, i32, i32) {
    %c0_i32 = arith.constant 0 : i32
    %c0_i32_0 = arith.constant 0 : i32
    %c0_i32_1 = arith.constant 0 : i32
    return %arg0, %c0_i32, %c0_i32_0 : i32, i32, i32
  }
  func.func @transform_15(%arg0: i32) -> (i32, i32, i32) {
    %c0_i32 = arith.constant 0 : i32
    %c0_i32_0 = arith.constant 0 : i32
    %c0_i32_1 = arith.constant 0 : i32
    return %arg0, %c0_i32, %c0_i32_0 : i32, i32, i32
  }
}

</mosaic_0001>

<bundles_post_ra>
// kernel: tpu_custom_call.1
= control target key start
LH: loop header
LB: loop body
LE: loop exit
PB: predicated region body
PF: predicated region fallthrough
CT: control target
= control target key end

     0   :  { %21 = vsyncpa [#allocation5], 0  ;;  %s3215_s0 = inlined_call_operand.hbm [shape: bf16[1,8,64], index: 0, kind: input, shape index: {}]   ;;  %s3216_s1 = inlined_call_operand.hbm [shape: f32[1,2,32], index: 1, kind: input, shape index: {}]   ;;  %s3217_s2 = inlined_call_operand.hbm [shape: f32[1,2,32], index: 2, kind: input, shape index: {}]   ;;  %s3218_s3 = inlined_call_operand.hbm [shape: bf16[64,128], index: 3, kind: input, shape index: {}]   ;;  %s3219_s4 = inlined_call_operand.hbm [shape: bf16[32,128], index: 4, kind: input, shape index: {}]   ;;  %s3220_s5 = inlined_call_operand.hbm [shape: f32[1,128], index: 5, kind: input, shape index: {}]   ;;  %s3221_s6 = inlined_call_operand.hbm [shape: bf16[32,128], index: 6, kind: input, shape index: {}]   ;;  %s3222_s7 = inlined_call_operand.hbm [shape: bf16[32,128], index: 7, kind: input, shape index: {}]   ;;  %s3223_s8 = inlined_call_operand.hbm [shape: f32[1,128], index: 8, kind: input, shape index: {}]   ;;  %s3224_s9 = inlined_call_operand.vmem [shape: bf16[32,32], index: 9, kind: input, shape index: {}]   ;;  %s3225_s10 = inlined_call_operand.vmem [shape: f32[1,32], index: 10, kind: input, shape index: {}]   ;;  %s3226_s11 = inlined_call_operand.hbm [shape: bf16[32,128], index: 11, kind: input, shape index: {}]   ;;  %s3227_s12 = inlined_call_operand.vmem [shape: f32[1,128], index: 12, kind: input, shape index: {}]   ;;  %s3228_s13 = inlined_call_operand.hbm [shape: f32[1,8,128], index: 13, kind: output, shape index: {0}]   ;;  %s3229_s14 = inlined_call_operand.hbm [shape: f32[1,2,32], index: 14, kind: output, shape index: {1}]   ;;  %s3230_s15 = inlined_call_operand.hbm [shape: f32[1,2,32], index: 15, kind: output, shape index: {2}]  }
   0x1   :  { %22 = vsyncpa [#allocation8], 0 }
   0x2   :  { %23 = vsyncpa [#allocation11], 0 }
   0x3   :  { %24 = vsyncpa [#allocation14], 0 }
   0x4   :  { %25 = vsyncpa [#allocation17], 0 }
   0x5   :  { %26 = vsyncpa [#allocation20], 0 }
   0x6   :  { %27 = vsyncpa [#allocation6], 0 }
   0x7   :  { %28 = vsyncpa [#allocation23], 0  ;;  %s2695_s18 = smov [#allocation7]   ;;  %s2696_s20 = smov [#allocation10]  }
   0x8   :  { %s45_s19 = sshll.u32 %s2695_s18, 4  ;;  %s64_s21 = sshll.u32 %s2696_s20, 4  ;;  %s46_s19 = int_to_ptr.vmem [resolvable:$true] %s45_s19  ;;  %s65_s21 = int_to_ptr.vmem [resolvable:$true] %s64_s21 }
   0x9   :  { %s2427_s22 = scalar_lea.vmem %s46_s19, 32  ;;  %p2432_p1 = scmp.lt.s32.totalorder %s46_s19, %s46_s19 }
   0xa   :  { %p2428_p0 = scmp.ne.s32.totalorder %s46_s19, %s2427_s22  ;;  %p2433_p2 = scmp.lt.s32.totalorder %s2427_s22, %s2427_s22 }
   0xc   :  { %p2434_p3 = por %p2433_p2, %p2432_p1 }
   0xe   :  { %p2435_p4 = pnand %p2434_p3, %p2428_p0 }
  0x10   :  { %2438 = shalt.err (!%p2435_p4)
}
  0x11   :  { %48 = dma.hbm_to_vmem [thread:$0]  %s3216_s1, 32, %s46_s19, [#allocation8]  }
  0x12   :  { %s2447_s25 = scalar_lea.vmem %s65_s21, 512  ;;  %p2452_p6 = scmp.lt.s32.totalorder %s65_s21, %s65_s21 }
  0x13   :  { %p2448_p5 = scmp.ne.s32.totalorder %s65_s21, %s2447_s25  ;;  %p2453_p7 = scmp.lt.s32.totalorder %s2447_s25, %s2447_s25 }
  0x15   :  { %p2454_p8 = por %p2453_p7, %p2452_p6 }
  0x17   :  { %p2455_p9 = pnand %p2454_p8, %p2448_p5 }
  0x19   :  { %2458 = shalt.err (!%p2455_p9)
}
  0x1a   :  { %s2697_s26 = smov 64   ;;  %s2698_s27 = smov 4  }
  0x1b   :  { %70 = dma.hbm_to_vmem [thread:$0]  %s3218_s3, 512, %s65_s21, [#allocation11], %s2697_s26, %s2697_s26, %s2698_s27  }
  0x1c   :  { %s2699_s30 = smov [#allocation13]   ;;  %s2700_s17 = smov [#allocation16]  }
  0x1d   :  { %s89_s16 = sshll.u32 %s2699_s30, 4  ;;  %s110_s1 = sshll.u32 %s2700_s17, 4  ;;  %s90_s16 = int_to_ptr.vmem [resolvable:$true] %s89_s16  ;;  %s111_s1 = int_to_ptr.vmem [resolvable:$true] %s110_s1 }
  0x1e   :  { %s2467_s18 = scalar_lea.vmem %s90_s16, 16  ;;  %s2471_s19 = scalar_lea.vmem %s90_s16, 32 }
  0x1f   :  { %p2468_p10 = scmp.ne.s32.totalorder %s90_s16, %s2467_s18  ;;  %p2472_p11 = scmp.lt.s32.totalorder %s90_s16, %s90_s16 }
  0x20   :  { %p2473_p12 = scmp.lt.s32.totalorder %s2471_s19, %s2467_s18 }
  0x22   :  { %p2474_p13 = por %p2473_p12, %p2472_p11 }
  0x24   :  { %p2475_p0 = pnand %p2474_p13, %p2468_p10 }
  0x26   :  { %2478 = shalt.err (!%p2475_p0)
}
  0x27   :  { %92 = dma.hbm_to_vmem [thread:$0]  %s3220_s5, 16, %s90_s16, [#allocation14]  }
  0x28   :  { %s2487_s23 = scalar_lea.vmem %s111_s1, 256  ;;  %p2492_p2 = scmp.lt.s32.totalorder %s111_s1, %s111_s1 }
  0x29   :  { %p2488_p1 = scmp.ne.s32.totalorder %s111_s1, %s2487_s23  ;;  %p2493_p3 = scmp.lt.s32.totalorder %s2487_s23, %s2487_s23 }
  0x2b   :  { %p2494_p4 = por %p2493_p3, %p2492_p2 }
  0x2d   :  { %p2495_p5 = pnand %p2494_p4, %p2488_p1 }
  0x2f   :  { %2498 = shalt.err (!%p2495_p5)
}
  0x30   :  { %116 = dma.hbm_to_vmem [thread:$0]  %s3222_s7, 256, %s111_s1, [#allocation17], %s2697_s26, %s2697_s26, %s2698_s27  }
  0x31   :  { %s2701_s24 = smov [#allocation4]   ;;  %s2702_s28 = smov [#allocation9]  }
  0x32   :  { %s35_s25 = sshll.u32 %s2701_s24, 4  ;;  %s55_s29 = sshll.u32 %s2702_s28, 4  ;;  %s36_s25 = int_to_ptr.vmem [resolvable:$true] %s35_s25  ;;  %s56_s29 = int_to_ptr.vmem [resolvable:$true] %s55_s29 }
  0x33   :  { %s2507_s5 = scalar_lea.vmem %s36_s25, 64  ;;  %p2512_p7 = scmp.lt.s32.totalorder %s36_s25, %s36_s25 }
  0x34   :  { %p2508_p6 = scmp.ne.s32.totalorder %s36_s25, %s2507_s5  ;;  %p2513_p8 = scmp.lt.s32.totalorder %s2507_s5, %s2507_s5 }
  0x36   :  { %p2514_p9 = por %p2513_p8, %p2512_p7 }
  0x38   :  { %p2515_p10 = pnand %p2514_p9, %p2508_p6 }
  0x3a   :  { %2518 = shalt.err (!%p2515_p10)
}
  0x3b   :  { %38 = dma.hbm_to_vmem [thread:$0]  %s3215_s0, 64, %s36_s25, [#allocation5]  }
  0x3c   :  { %s2527_s17 = scalar_lea.vmem %s56_s29, 32  ;;  %p2532_p12 = scmp.lt.s32.totalorder %s56_s29, %s56_s29 }
  0x3d   :  { %p2528_p11 = scmp.ne.s32.totalorder %s56_s29, %s2527_s17  ;;  %p2533_p13 = scmp.lt.s32.totalorder %s2527_s17, %s2527_s17 }
  0x3f   :  { %p2534_p0 = por %p2533_p13, %p2532_p12 }
  0x41   :  { %p2535_p1 = pnand %p2534_p0, %p2528_p11 }
  0x43   :  { %2538 = shalt.err (!%p2535_p1)
}
  0x44   :  { %58 = dma.hbm_to_vmem [thread:$0]  %s3217_s2, 32, %s56_s29, [#allocation8]  }
  0x45   :  { %s2703_s18 = smov [#allocation12]   ;;  %s2704_s20 = smov [#allocation15]  }
  0x46   :  { %s76_s19 = sshll.u32 %s2703_s18, 4  ;;  %s98_s22 = sshll.u32 %s2704_s20, 4  ;;  %s77_s19 = int_to_ptr.vmem [resolvable:$true] %s76_s19  ;;  %s99_s22 = int_to_ptr.vmem [resolvable:$true] %s98_s22 }
  0x47   :  { %s2547_s23 = scalar_lea.vmem %s77_s19, 256  ;;  %p2552_p3 = scmp.lt.s32.totalorder %s77_s19, %s77_s19 }
  0x48   :  { %p2548_p2 = scmp.ne.s32.totalorder %s77_s19, %s2547_s23  ;;  %p2553_p4 = scmp.lt.s32.totalorder %s2547_s23, %s2547_s23 }
  0x4a   :  { %p2554_p5 = por %p2553_p4, %p2552_p3 }
  0x4c   :  { %p2555_p6 = pnand %p2554_p5, %p2548_p2 }
  0x4e   :  { %2558 = shalt.err (!%p2555_p6)
}
  0x4f   :  { %82 = dma.hbm_to_vmem [thread:$0]  %s3219_s4, 256, %s77_s19, [#allocation11], %s2697_s26, %s2697_s26, %s2698_s27  }
  0x50   :  { %s2567_s2 = scalar_lea.vmem %s99_s22, 256  ;;  %p2572_p8 = scmp.lt.s32.totalorder %s99_s22, %s99_s22 }
  0x51   :  { %p2568_p7 = scmp.ne.s32.totalorder %s99_s22, %s2567_s2  ;;  %p2573_p9 = scmp.lt.s32.totalorder %s2567_s2, %s2567_s2 }
  0x53   :  { %p2574_p10 = por %p2573_p9, %p2572_p8 }
  0x55   :  { %p2575_p11 = pnand %p2574_p10, %p2568_p7 }
  0x57   :  { %2578 = shalt.err (!%p2575_p11)
}
  0x58   :  { %104 = dma.hbm_to_vmem [thread:$0]  %s3221_s6, 256, %s99_s22, [#allocation14], %s2697_s26, %s2697_s26, %s2698_s27  }
  0x59   :  { %s2705_s25 = smov [#allocation18]   ;;  %s2706_s29 = smov [#allocation19]  }
  0x5a   :  { %s123_s28 = sshll.u32 %s2705_s25, 4  ;;  %s136_s5 = sshll.u32 %s2706_s29, 4  ;;  %s124_s28 = int_to_ptr.vmem [resolvable:$true] %s123_s28  ;;  %s137_s5 = int_to_ptr.vmem [resolvable:$true] %s136_s5 }
  0x5b   :  { %s2587_s4 = scalar_lea.vmem %s124_s28, 16  ;;  %s2591_s30 = scalar_lea.vmem %s124_s28, 32 }
  0x5c   :  { %p2588_p12 = scmp.ne.s32.totalorder %s124_s28, %s2587_s4  ;;  %p2592_p13 = scmp.lt.s32.totalorder %s124_s28, %s124_s28 }
  0x5d   :  { %p2593_p0 = scmp.lt.s32.totalorder %s2591_s30, %s2587_s4 }
  0x5f   :  { %p2594_p1 = por %p2593_p0, %p2592_p13 }
  0x61   :  { %p2595_p2 = pnand %p2594_p1, %p2588_p12 }
  0x63   :  { %2598 = shalt.err (!%p2595_p2)
}
  0x64   :  { %126 = dma.hbm_to_vmem [thread:$0]  %s3223_s8, 16, %s124_s28, [#allocation17]  }
  0x65   :  { %s2607_s7 = scalar_lea.vmem %s137_s5, 256  ;;  %p2612_p4 = scmp.lt.s32.totalorder %s137_s5, %s137_s5 }
  0x66   :  { %p2608_p3 = scmp.ne.s32.totalorder %s137_s5, %s2607_s7  ;;  %p2613_p5 = scmp.lt.s32.totalorder %s2607_s7, %s2607_s7 }
  0x68   :  { %p2614_p6 = por %p2613_p5, %p2612_p4 }
  0x6a   :  { %p2615_p7 = pnand %p2614_p6, %p2608_p3 }
  0x6c   :  { %2618 = shalt.err (!%p2615_p7)
}
  0x6d   :  { %142 = dma.hbm_to_vmem [thread:$0]  %s3226_s11, 256, %s137_s5, [#allocation20], %s2697_s26, %s2697_s26, %s2698_s27  }
  0x6e   :  { %2679 = dma.done.wait [#allocation5], 64  }
  0x6f   :  { %2680 = vsyncadd [#allocation5], 4294967232 }
  0x70   :  { %2681 = dma.done.wait [#allocation8], 64  }
  0x71   :  { %2682 = vsyncadd [#allocation8], 4294967232 }
  0x72   :  { %2683 = dma.done.wait [#allocation11], 768  }
  0x73   :  { %2684 = vsyncadd [#allocation11], 4294966528 }
  0x74   :  { %2685 = dma.done.wait [#allocation14], 272  }
  0x75   :  { %2686 = vsyncadd [#allocation14], 4294967024 }
  0x76   :  { %2687 = dma.done.wait [#allocation17], 272  }
  0x77   :  { %2688 = vsyncadd [#allocation17], 4294967024 }
  0x78   :  { %2689 = dma.done.wait [#allocation20], 256  }
  0x79   :  { %2690 = vsyncadd [#allocation20], 4294967040  ;;  %v2707_v0 = vmov 0.0   ;;  %vm2708_vm0 = vmmov 0   ;;  %v2277_v1 = vld [vmem:[#allocation10 + $0x18] sm:$0xff]   ;;  %v2278_v2 = vld [vmem:[#allocation10 + $0x10] sm:$0xff]  }
  0x7a   :  { %2074 = vmatprep.subr.bf16.mxu0 %v2707_v0  ;;  %2086 = vmatprep.subr.bf16.mxu1 %v2707_v0  ;;  %v2846_v3 = vld [vmem:[#allocation12 + $0x8] sm:$0xff]   ;;  %v2849_v5 = vld [vmem:[#allocation12] sm:$0xff]   ;;  %v176_v6 = vld [vmem:[#allocation7] sm:$0x3]  ;;  %vm280_vm1 = vcmask 261120   ;;  %vm218_vm2 = vcmask 523264  }
  0x7b   :  { %2082 = vmatprep.mubr.msk.bf16.mxu0 %vm2708_vm0, %v2707_v0  ;;  %2090 = vmatprep.mubr.msk.bf16.mxu1 %vm2708_vm0, %v2707_v0  ;;  %v2279_v4 = vld [vmem:[#allocation10 + $0x8] sm:$0xff]   ;;  %v2280_v7 = vld [vmem:[#allocation10] sm:$0xff]   ;;  %v2853_v8 = vpack.c.bf16 %v176_v6, %v176_v6  ;;  %v178_v9 = vld [vmem:[#allocation4] sm:$0xf]  ;;  %s2709_s8 = smov 32   ;;  %vm361_vm3 = vcmask 253952  }
  0x7c   :  { %2075 = vmatpush3.bf16.msra.mxu0 %v2277_v1  ;;  %2087 = vmatpush3.bf16.msra.mxu1 %v2846_v3  ;;  %v1926_v11 = vld [vmem:[#allocation13] ss:$0 sm:$0xff]  ;;  %v2874_v23 = vld [vmem:[#allocation9] sm:$0x3]  ;;  %vm362_vm4 = vsmask.f32 256 }
  0x7d   :  { %2076 = vmatprep.subr.bf16.mxu0 %v2707_v0  ;;  %2088 = vmatprep.subr.bf16.mxu1 %v2707_v0  ;;  %vm2975_vm5 = vmand %vm361_vm3, %vm362_vm4  ;;  %vm704_vm6 = vcmask 256002   ;;  %vm705_vm7 = vsmask.f32 2304  ;;  %vm448_vm9 = vsmask.f32 7938  ;;  %vm532_vm11 = vcmask 254977  }
  0x7e   :  { %vm2983_vm8 = vmand %vm704_vm6, %vm705_vm7  ;;  %vm533_vm12 = vsmask.f32 1280  ;;  %vm876_vm14 = vcmask 257027   ;;  %vm877_vm15 = vsmask.f32 3328  ;;  %s2711_s22 = smov [#allocation22]  }
  0x7f   :  { %vm2990_vm10 = vmand %vm361_vm3, %vm448_vm9  ;;  %vm620_vm3 = vsmask.f32 7942  ;;  %vm792_vm7 = vsmask.f32 7946  ;;  %vm964_vm9 = vsmask.f32 7950 }
  0x80   :  { %2077 = vmatpush3.bf16.msra.mxu0 %v2278_v2  ;;  %2089 = vmatpush3.bf16.msra.mxu1 %v2849_v5  ;;  %vm3005_vm13 = vmand %vm532_vm11, %vm533_vm12  ;;  %s1895_s23 = sshll.u32 %s2711_s22, 4  ;;  %s1896_s23 = int_to_ptr.vmem [resolvable:$true] %s1895_s23 }
  0x81   :  { %2078 = vmatprep.subr.bf16.mxu0 %v2707_v0  ;;  %2094 = vmatprep.subr.bf16.mxu1 %v2707_v0  ;;  %vm3030_vm4 = vmand %vm532_vm11, %vm620_vm3  ;;  %s2619_s0 = scalar_lea.vmem %s1896_s23, 32  ;;  %p2624_p9 = scmp.lt.s32.totalorder %s1896_s23, %s1896_s23 }
  0x82   :  { %vm3048_vm11 = vmand %vm704_vm6, %vm792_vm7  ;;  %p2620_p8 = scmp.ne.s32.totalorder %s1896_s23, %s2619_s0  ;;  %p2625_p10 = scmp.lt.s32.totalorder %s2619_s0, %s2619_s0 }
  0x83   :  { %2091 = vmatmul.mubr.msk.bf16.vlgmr.msra.gmra.mxu1 %vm280_vm1, %v2853_v8  ;;  %vm3053_vm12 = vmand %vm876_vm14, %vm964_vm9 }
  0x84   :  { %2079 = vmatpush3.bf16.msra.mxu0 %v2279_v4  ;;  %2095 = vmatpush3.bf16.msra.mxu1 %v2846_v3  ;;  %p2626_p11 = por %p2625_p10, %p2624_p9 }
  0x85   :  { %2080 = vmatprep.subr.bf16.mxu0 %v2707_v0  ;;  %2096 = vmatprep.subr.bf16.mxu1 %v2707_v0 }
  0x86   :  { %2098 = vmatprep.mubr.msk.bf16.mxu1 %vm2708_vm0, %v2707_v0  ;;  %p2627_p12 = pnand %p2626_p11, %p2620_p8 }
  0x88   :  { %2081 = vmatpush3.bf16.msra.mxu0 %v2280_v7  ;;  %2097 = vmatpush3.bf16.msra.mxu1 %v2849_v5 }
  0x89   :  { %2102 = vmatprep.subr.bf16.mxu0 %v2707_v0  ;;  %2110 = vmatprep.subr.bf16.mxu1 %v2707_v0 }
  0x8b   :  { %2083 = vmatmul.mubr.msk.bf16.vlgmr.msra.gmra.mxu0 %vm218_vm2, %v178_v9  ;;  %vm3018_vm2 = vmand %vm876_vm14, %vm877_vm15 }
  0x8c   :  { %2103 = vmatpush3.bf16.msra.mxu0 %v2846_v3  ;;  %2106 = vmatprep.mubr.msk.bf16.mxu0 %vm2708_vm0, %v2707_v0 }
  0x8d   :  { %2104 = vmatprep.subr.bf16.mxu0 %v2707_v0 }
  0x90   :  { %2105 = vmatpush3.bf16.msra.mxu0 %v2849_v5 }
  0x91   :  { %2118 = vmatprep.subr.bf16.mxu0 %v2707_v0 }
 0x143   :  { %v318_v10 = vpop.f32.mrf.mxu1 }
 0x145   :  { %v2092_v12 = vpop.f32.mrf.mxu1 }
 0x147   :  { %v321_v14 = vpop.f32.mrf.mxu1 }
 0x149   :  { %v2093_v17 = vpop.f32.mrf.mxu1 }
 0x14b   :  { %v256_v13 = vpop.f32.mrf.mxu0 }
 0x14c   :  { %v257_v15 = vadd.f32 %v1926_v11, %v256_v13 }
 0x14d   :  { %v2084_v16 = vpop.f32.mrf.mxu0 }
 0x14e   :  { %262 = vst [vmem:[#allocation3] sm:$0xff] %v257_v15 }
 0x14f   :  { %v259_v18 = vpop.f32.mrf.mxu0 }
 0x151   :  { %v2085_v19 = vpop.f32.mrf.mxu0 }
 0x155   :  { %v324_v20 = vld [vmem:[#allocation3] sm:$0x1]  ;;  %v412_v40 = vld [vmem:[#allocation3 + $0x1] sm:$0x1]  ;;  %v498_v61 = vld [vmem:[#allocation3 + $0x2] sm:$0x1] }
 0x156   :  { %v325_v21 = vadd.f32 %v324_v20, %v318_v10 }
 0x158   :  { %2291 = vtanh.f32 %v325_v21  ;;  %v1935_v24 = vmul.f32 -1.442695, %v325_v21 }
 0x15a   :  { %2293 = vpow2.f32 %v1935_v24 }
 0x165   :  { %v2292_v22 = vpop.eup %2291 }
 0x166   :  { %339 = vrot.lane.b32.xlu0 %v2292_v22, %s2697_s26  ;;  %v583_v22 = vld [vmem:[#allocation3 + $0x3] sm:$0x1] }
 0x167   :  { %v2294_v25 = vpop.eup %2293 }
 0x168   :  { %v329_v26 = vadd.f32 1.0, %v2294_v25 }
 0x16a   :  { %334 = vrot.lane.b32.xlu0 %v2874_v23, %s2709_s8  ;;  %2295 = vrcp.f32 %v329_v26 }
 0x177   :  { %v2296_v27 = vpop.eup %2295 }
 0x1d8   :  { %v340_v28 = vpop.permute.xlu0 %339 }
 0x1d9   :  { %v342_v29 = vmul.f32 %v2296_v27, %v340_v28 }
 0x1db   :  { %344 = vrot.lane.b32.xlu1 %v342_v29, %s2709_s8 }
 0x1dc   :  { %v335_v30 = vpop.permute.xlu0 %334 }
 0x1dd   :  { %v337_v31 = vmul.f32 %v2296_v27, %v335_v30 }
 0x24d   :  { %v345_v32 = vpop.permute.xlu1 %344 }
 0x24e   :  { %v347_v33 = vadd.f32 %v345_v32, %v337_v31 }
 0x250   :  { %2297 = vtanh.f32 %v347_v33 }
 0x25d   :  { %v2298_v34 = vpop.eup %2297 }
 0x25e   :  { %350 = vrot.lane.b32.xlu1 %v2298_v34, %s2697_s26 }
 0x2d0   :  { %v351_v35 = vpop.permute.xlu1 %350 }
 0x2d1   :  { %v353_v36 = vmul.f32 %v2296_v27, %v351_v35 }
 0x2d3   :  { %v2880_v37 = vpack.c.bf16 %v353_v36, %v353_v36 }
 0x2d5   :  { %367 = vrot.lane.b32.xlu0 %v2880_v37, %s2709_s8 }
 0x347   :  { %v368_v38 = vpop.permute.xlu0 %367 }
 0x348   :  { %2099 = vmatmul.mubr.msk.bf16.vlgmr.msra.gmra.mxu1 %vm280_vm1, %v368_v38 }
 0x349   :  { %2111 = vmatpush3.bf16.msra.mxu1 %v2846_v3  ;;  %2114 = vmatprep.mubr.msk.bf16.mxu1 %vm2708_vm0, %v2707_v0 }
 0x34a   :  { %2112 = vmatprep.subr.bf16.mxu1 %v2707_v0 }
 0x34d   :  { %2113 = vmatpush3.bf16.msra.mxu1 %v2849_v5 }
 0x34e   :  { %2126 = vmatprep.subr.bf16.mxu1 %v2707_v0 }
 0x408   :  { %v406_v39 = vpop.f32.mrf.mxu1 }
 0x409   :  { %v413_v41 = vadd.f32 %v412_v40, %v406_v39 }
 0x40a   :  { %v2100_v42 = vpop.f32.mrf.mxu1 }
 0x40b   :  { %2299 = vtanh.f32 %v413_v41  ;;  %v1938_v46 = vmul.f32 -1.442695, %v413_v41 }
 0x40c   :  { %v409_v43 = vpop.f32.mrf.mxu1 }
 0x40d   :  { %2301 = vpow2.f32 %v1938_v46 }
 0x40e   :  { %v2101_v44 = vpop.f32.mrf.mxu1 }
 0x418   :  { %v2300_v45 = vpop.eup %2299 }
 0x419   :  { %423 = vrot.lane.b32.xlu1 %v2300_v45, %s2697_s26 }
 0x41a   :  { %v2302_v47 = vpop.eup %2301 }
 0x41b   :  { %v417_v48 = vadd.f32 1.0, %v2302_v47 }
 0x41d   :  { %2303 = vrcp.f32 %v417_v48 }
 0x42a   :  { %v2304_v49 = vpop.eup %2303 }
 0x42b   :  { %v421_v52 = vmul.f32 %v2304_v49, %v347_v33 }
 0x48b   :  { %v424_v50 = vpop.permute.xlu1 %423 }
 0x48c   :  { %v426_v51 = vmul.f32 %v2304_v49, %v424_v50 }
 0x48e   :  { %428 = vrot.lane.b32.xlu0 %v426_v51, %s2709_s8 }
 0x500   :  { %v429_v53 = vpop.permute.xlu0 %428 }
 0x501   :  { %v431_v54 = vadd.f32 %v429_v53, %v421_v52 }
 0x503   :  { %2305 = vtanh.f32 %v431_v54 }
 0x510   :  { %v2306_v55 = vpop.eup %2305 }
 0x511   :  { %434 = vrot.lane.b32.xlu1 %v2306_v55, %s2697_s26 }
 0x583   :  { %v435_v56 = vpop.permute.xlu1 %434 }
 0x584   :  { %v437_v57 = vmul.f32 %v2304_v49, %v435_v56  ;;  %v670_v49 = vld [vmem:[#allocation3 + $0x4] sm:$0x1] }
 0x586   :  { %v2894_v58 = vpack.c.bf16 %v437_v57, %v437_v57 }
 0x588   :  { %453 = vrot.lane.b32.xlu0 %v2894_v58, %s2709_s8  ;;  %v443_v44 = vshll.u32 %v2894_v58, 16 }
 0x5fa   :  { %v454_v59 = vpop.permute.xlu0 %453 }
 0x5fb   :  { %2107 = vmatmul.mubr.msk.bf16.vlgmr.msra.gmra.mxu0 %vm280_vm1, %v454_v59 }
 0x5fc   :  { %2119 = vmatpush3.bf16.msra.mxu0 %v2846_v3  ;;  %2122 = vmatprep.mubr.msk.bf16.mxu0 %vm2708_vm0, %v2707_v0 }
 0x5fd   :  { %2120 = vmatprep.subr.bf16.mxu0 %v2707_v0 }
 0x600   :  { %2121 = vmatpush3.bf16.msra.mxu0 %v2849_v5 }
 0x601   :  { %2134 = vmatprep.subr.bf16.mxu0 %v2707_v0 }
 0x6bb   :  { %v492_v60 = vpop.f32.mrf.mxu0 }
 0x6bc   :  { %v499_v62 = vadd.f32 %v498_v61, %v492_v60 }
 0x6bd   :  { %v2108_v63 = vpop.f32.mrf.mxu0 }
 0x6be   :  { %2307 = vtanh.f32 %v499_v62  ;;  %v1941_v6 = vmul.f32 -1.442695, %v499_v62 }
 0x6bf   :  { %v495_v1 = vpop.f32.mrf.mxu0 }
 0x6c0   :  { %2309 = vpow2.f32 %v1941_v6 }
 0x6c1   :  { %v2109_v2 = vpop.f32.mrf.mxu0 }
 0x6cb   :  { %v2308_v4 = vpop.eup %2307 }
 0x6cc   :  { %509 = vrot.lane.b32.xlu1 %v2308_v4, %s2697_s26 }
 0x6cd   :  { %v2310_v7 = vpop.eup %2309 }
 0x6ce   :  { %v503_v9 = vadd.f32 1.0, %v2310_v7 }
 0x6d0   :  { %2311 = vrcp.f32 %v503_v9 }
 0x6dd   :  { %v2312_v10 = vpop.eup %2311 }
 0x6de   :  { %v507_v13 = vmul.f32 %v2312_v10, %v431_v54 }
 0x73e   :  { %v510_v11 = vpop.permute.xlu1 %509 }
 0x73f   :  { %v512_v12 = vmul.f32 %v2312_v10, %v510_v11 }
 0x741   :  { %514 = vrot.lane.b32.xlu0 %v512_v12, %s2709_s8 }
 0x7b3   :  { %v515_v14 = vpop.permute.xlu0 %514 }
 0x7b4   :  { %v517_v15 = vadd.f32 %v515_v14, %v507_v13 }
 0x7b6   :  { %2313 = vtanh.f32 %v517_v15 }
 0x7c3   :  { %v2314_v16 = vpop.eup %2313 }
 0x7c4   :  { %520 = vrot.lane.b32.xlu1 %v2314_v16, %s2697_s26 }
 0x836   :  { %v521_v17 = vpop.permute.xlu1 %520 }
 0x837   :  { %v523_v18 = vmul.f32 %v2312_v10, %v521_v17  ;;  %v755_v10 = vld [vmem:[#allocation3 + $0x5] sm:$0x1] }
 0x839   :  { %v2908_v19 = vpack.c.bf16 %v523_v18, %v523_v18 }
 0x83b   :  { %538 = vrot.lane.b32.xlu0 %v2908_v19, %s2709_s8 }
 0x8ad   :  { %v539_v20 = vpop.permute.xlu0 %538 }
 0x8ae   :  { %2115 = vmatmul.mubr.msk.bf16.vlgmr.msra.gmra.mxu1 %vm280_vm1, %v539_v20 }
 0x8af   :  { %2127 = vmatpush3.bf16.msra.mxu1 %v2846_v3  ;;  %2130 = vmatprep.mubr.msk.bf16.mxu1 %vm2708_vm0, %v2707_v0 }
 0x8b0   :  { %2128 = vmatprep.subr.bf16.mxu1 %v2707_v0 }
 0x8b3   :  { %2129 = vmatpush3.bf16.msra.mxu1 %v2849_v5 }
 0x8b4   :  { %2142 = vmatprep.subr.bf16.mxu1 %v2707_v0 }
 0x96e   :  { %v577_v21 = vpop.f32.mrf.mxu1 }
 0x96f   :  { %v584_v24 = vadd.f32 %v583_v22, %v577_v21 }
 0x970   :  { %v2116_v25 = vpop.f32.mrf.mxu1 }
 0x971   :  { %2315 = vtanh.f32 %v584_v24  ;;  %v1944_v29 = vmul.f32 -1.442695, %v584_v24 }
 0x972   :  { %v580_v26 = vpop.f32.mrf.mxu1 }
 0x973   :  { %2317 = vpow2.f32 %v1944_v29 }
 0x974   :  { %v2117_v27 = vpop.f32.mrf.mxu1 }
 0x97e   :  { %v2316_v28 = vpop.eup %2315 }
 0x97f   :  { %594 = vrot.lane.b32.xlu1 %v2316_v28, %s2697_s26 }
 0x980   :  { %v2318_v30 = vpop.eup %2317 }
 0x981   :  { %v588_v31 = vadd.f32 1.0, %v2318_v30 }
 0x983   :  { %2319 = vrcp.f32 %v588_v31  ;;  %v842_v31 = vld [vmem:[#allocation3 + $0x6] sm:$0x1] }
 0x990   :  { %v2320_v32 = vpop.eup %2319 }
 0x991   :  { %v592_v35 = vmul.f32 %v2320_v32, %v517_v15 }
 0x9f1   :  { %v595_v33 = vpop.permute.xlu1 %594 }
 0x9f2   :  { %v597_v34 = vmul.f32 %v2320_v32, %v595_v33 }
 0x9f4   :  { %599 = vrot.lane.b32.xlu0 %v597_v34, %s2709_s8 }
 0xa66   :  { %v600_v36 = vpop.permute.xlu0 %599 }
 0xa67   :  { %v602_v38 = vadd.f32 %v600_v36, %v592_v35 }
 0xa69   :  { %2321 = vtanh.f32 %v602_v38 }
 0xa76   :  { %v2322_v39 = vpop.eup %2321 }
 0xa77   :  { %605 = vrot.lane.b32.xlu1 %v2322_v39, %s2697_s26 }
 0xae9   :  { %v606_v40 = vpop.permute.xlu1 %605 }
 0xaea   :  { %v608_v41 = vmul.f32 %v2320_v32, %v606_v40 }
 0xaec   :  { %v609_v42 = vpack.c.bf16 %v608_v41, %v608_v41 }
 0xaee   :  { %v614_v43 = vshll.u32 %v609_v42, 16  ;;  %625 = vrot.lane.b32.xlu0 %v609_v42, %s2709_s8 }
 0xaf0   :  { %v616_v45 = vrot.slane %v614_v43, 7 }
 0xaf2   :  { %v2924_v46 = vpack.i.bf16 %v616_v45, %v443_v44 }
 0xb60   :  { %v626_v47 = vpop.permute.xlu0 %625 }
 0xb61   :  { %2123 = vmatmul.mubr.msk.bf16.vlgmr.msra.gmra.mxu0 %vm280_vm1, %v626_v47 }
 0xb62   :  { %2135 = vmatpush3.bf16.msra.mxu0 %v2846_v3  ;;  %2138 = vmatprep.mubr.msk.bf16.mxu0 %vm2708_vm0, %v2707_v0 }
 0xb63   :  { %2136 = vmatprep.subr.bf16.mxu0 %v2707_v0 }
 0xb66   :  { %2137 = vmatpush3.bf16.msra.mxu0 %v2849_v5 }
 0xb67   :  { %2150 = vmatprep.subr.bf16.mxu0 %v2707_v0 }
 0xc21   :  { %v664_v48 = vpop.f32.mrf.mxu0 }
 0xc22   :  { %v671_v50 = vadd.f32 %v670_v49, %v664_v48 }
 0xc23   :  { %v2124_v51 = vpop.f32.mrf.mxu0 }
 0xc24   :  { %2323 = vtanh.f32 %v671_v50  ;;  %v1947_v55 = vmul.f32 -1.442695, %v671_v50 }
 0xc25   :  { %v667_v52 = vpop.f32.mrf.mxu0 }
 0xc26   :  { %2325 = vpow2.f32 %v1947_v55 }
 0xc27   :  { %v2125_v53 = vpop.f32.mrf.mxu0 }
 0xc31   :  { %v2324_v54 = vpop.eup %2323 }
 0xc32   :  { %681 = vrot.lane.b32.xlu1 %v2324_v54, %s2697_s26  ;;  %v927_v54 = vld [vmem:[#allocation3 + $0x7] sm:$0x1] }
 0xc33   :  { %v2326_v56 = vpop.eup %2325 }
 0xc34   :  { %v675_v57 = vadd.f32 1.0, %v2326_v56 }
 0xc36   :  { %2327 = vrcp.f32 %v675_v57 }
 0xc43   :  { %v2328_v58 = vpop.eup %2327 }
 0xc44   :  { %v679_v61 = vmul.f32 %v2328_v58, %v602_v38 }
 0xca4   :  { %v682_v59 = vpop.permute.xlu1 %681 }
 0xca5   :  { %v684_v60 = vmul.f32 %v2328_v58, %v682_v59 }
 0xca7   :  { %686 = vrot.lane.b32.xlu0 %v684_v60, %s2709_s8 }
 0xd19   :  { %v687_v62 = vpop.permute.xlu0 %686 }
 0xd1a   :  { %v689_v63 = vadd.f32 %v687_v62, %v679_v61 }
 0xd1c   :  { %2329 = vtanh.f32 %v689_v63 }
 0xd29   :  { %v2330_v1 = vpop.eup %2329 }
 0xd2a   :  { %692 = vrot.lane.b32.xlu1 %v2330_v1, %s2697_s26 }
 0xd9c   :  { %v693_v2 = vpop.permute.xlu1 %692 }
 0xd9d   :  { %v695_v4 = vmul.f32 %v2328_v58, %v693_v2 }
 0xd9f   :  { %v2936_v6 = vpack.c.bf16 %v695_v4, %v695_v4 }
 0xda1   :  { %710 = vrot.lane.b32.xlu0 %v2936_v6, %s2709_s8  ;;  %v700_v4 = vrot.slane %v2936_v6, 6 }
 0xe13   :  { %v711_v7 = vpop.permute.xlu0 %710 }
 0xe14   :  { %2131 = vmatmul.mubr.msk.bf16.vlgmr.msra.gmra.mxu1 %vm280_vm1, %v711_v7 }
 0xe15   :  { %2143 = vmatpush3.bf16.msra.mxu1 %v2846_v3  ;;  %2146 = vmatprep.mubr.msk.bf16.mxu1 %vm2708_vm0, %v2707_v0 }
 0xe16   :  { %2144 = vmatprep.subr.bf16.mxu1 %v2707_v0 }
 0xe19   :  { %2145 = vmatpush3.bf16.msra.mxu1 %v2849_v5 }
 0xe1a   :  { %2158 = vmatprep.subr.bf16.mxu1 %v2707_v0 }
 0xed4   :  { %v749_v9 = vpop.f32.mrf.mxu1 }
 0xed5   :  { %v756_v11 = vadd.f32 %v755_v10, %v749_v9 }
 0xed6   :  { %v2132_v12 = vpop.f32.mrf.mxu1 }
 0xed7   :  { %2331 = vtanh.f32 %v756_v11  ;;  %v1950_v3 = vmul.f32 -1.442695, %v756_v11  ;;  %v364_v12 = vld [vmem:[#allocation2] sm:$0x1] }
 0xed8   :  { %v752_v13 = vpop.f32.mrf.mxu1 }
 0xed9   :  { %2333 = vpow2.f32 %v1950_v3  ;;  %v707_v13 = vld [vmem:[#allocation2] sm:$0x4] }
 0xeda   :  { %v2133_v14 = vpop.f32.mrf.mxu1 }
 0xee4   :  { %v2332_v15 = vpop.eup %2331 }
 0xee5   :  { %766 = vrot.lane.b32.xlu1 %v2332_v15, %s2697_s26 }
 0xee6   :  { %v2334_v16 = vpop.eup %2333 }
 0xee7   :  { %v760_v17 = vadd.f32 1.0, %v2334_v16 }
 0xee9   :  { %2335 = vrcp.f32 %v760_v17 }
 0xef6   :  { %v2336_v18 = vpop.eup %2335 }
 0xef7   :  { %v764_v21 = vmul.f32 %v2336_v18, %v689_v63 }
 0xf57   :  { %v767_v20 = vpop.permute.xlu1 %766 }
 0xf58   :  { %v769_v5 = vmul.f32 %v2336_v18, %v767_v20 }
 0xf5a   :  { %771 = vrot.lane.b32.xlu0 %v769_v5, %s2709_s8 }
 0xfcc   :  { %v772_v22 = vpop.permute.xlu0 %771 }
 0xfcd   :  { %v774_v24 = vadd.f32 %v772_v22, %v764_v21  ;;  %v528_v21 = vrot.slane %v2908_v19, 7 }
 0xfcf   :  { %2337 = vtanh.f32 %v774_v24 }
 0xfdc   :  { %v2338_v25 = vpop.eup %2337 }
 0xfdd   :  { %777 = vrot.lane.b32.xlu1 %v2338_v25, %s2697_s26 }
0x104f   :  { %v778_v26 = vpop.permute.xlu1 %777 }
0x1050   :  { %v780_v27 = vmul.f32 %v2336_v18, %v778_v26  ;;  %v2283_v26 = vld [vmem:[#allocation15 + $0x8] sm:$0xff]  }
0x1052   :  { %v2950_v28 = vpack.c.bf16 %v780_v27, %v780_v27  ;;  %v3002_v27 = vld [vmem:[#allocation16 + $0x8] sm:$0xff]  }
0x1054   :  { %797 = vrot.lane.b32.xlu0 %v2950_v28, %s2709_s8  ;;  %v786_v19 = vshll.u32 %v2950_v28, 16 }
0x10c6   :  { %v798_v29 = vpop.permute.xlu0 %797 }
0x10c7   :  { %2139 = vmatmul.mubr.msk.bf16.vlgmr.msra.gmra.mxu0 %vm280_vm1, %v798_v29 }
0x10c8   :  { %2154 = vmatprep.mubr.msk.bf16.mxu0 %vm2708_vm0, %v2707_v0  ;;  %2151 = vmatpush3.bf16.msra.mxu0 %v2283_v26 }
0x10c9   :  { %2152 = vmatprep.subr.bf16.mxu0 %v2707_v0 }
0x1187   :  { %v836_v30 = vpop.f32.mrf.mxu0 }
0x1188   :  { %v843_v32 = vadd.f32 %v842_v31, %v836_v30  ;;  %v535_v30 = vld [vmem:[#allocation2] sm:$0x2] }
0x1189   :  { %v2140_v33 = vpop.f32.mrf.mxu0 }
0x118a   :  { %2339 = vtanh.f32 %v843_v32  ;;  %v1953_v38 = vmul.f32 -1.442695, %v843_v32  ;;  %v2284_v32 = vld [vmem:[#allocation15] sm:$0xff]  }
0x118b   :  { %v839_v34 = vpop.f32.mrf.mxu0  ;;  %2153 = vmatpush3.bf16.msra.mxu0 %v2284_v32 }
0x118c   :  { %2341 = vpow2.f32 %v1953_v38  ;;  %v788_v38 = vrot.slane %v786_v19, 6  ;;  %2166 = vmatprep.subr.bf16.mxu0 %v2707_v0 }
0x118d   :  { %v2141_v35 = vpop.f32.mrf.mxu0 }
0x1197   :  { %v2340_v36 = vpop.eup %2339 }
0x1198   :  { %853 = vrot.lane.b32.xlu1 %v2340_v36, %s2697_s26  ;;  %v879_v36 = vld [vmem:[#allocation2] sm:$0x8] }
0x1199   :  { %v2342_v39 = vpop.eup %2341 }
0x119a   :  { %v847_v40 = vadd.f32 1.0, %v2342_v39 }
0x119c   :  { %2343 = vrcp.f32 %v847_v40 }
0x11a9   :  { %v2344_v41 = vpop.eup %2343 }
0x11aa   :  { %v851_v44 = vmul.f32 %v2344_v41, %v774_v24 }
0x120a   :  { %v854_v42 = vpop.permute.xlu1 %853 }
0x120b   :  { %v856_v43 = vmul.f32 %v2344_v41, %v854_v42 }
0x120d   :  { %858 = vrot.lane.b32.xlu0 %v856_v43, %s2709_s8  ;;  %v3025_v43 = vld [vmem:[#allocation16] sm:$0xff]  }
0x127f   :  { %v859_v45 = vpop.permute.xlu0 %858 }
0x1280   :  { %v861_v47 = vadd.f32 %v859_v45, %v851_v44  ;;  %v1041_v44 = vshrl.u32 %v2853_v8, 16  ;;  %v1107_v45 = vrot.slane %v2874_v23, 1 }
0x1282   :  { %2345 = vtanh.f32 %v861_v47 }
0x128f   :  { %v2346_v48 = vpop.eup %2345 }
0x1290   :  { %864 = vrot.lane.b32.xlu1 %v2346_v48, %s2697_s26 }
0x1302   :  { %v865_v49 = vpop.permute.xlu1 %864 }
0x1303   :  { %v867_v50 = vmul.f32 %v2344_v41, %v865_v49 }
0x1305   :  { %v868_v51 = vpack.c.bf16 %v867_v50, %v867_v50 }
0x1307   :  { %882 = vrot.lane.b32.xlu0 %v868_v51, %s2709_s8  ;;  %v872_v22 = vrot.slane %v868_v51, 5 }
0x1379   :  { %v883_v52 = vpop.permute.xlu0 %882 }
0x137a   :  { %2147 = vmatmul.mubr.msk.bf16.vlgmr.msra.gmra.mxu1 %vm280_vm1, %v883_v52 }
0x137b   :  { %2162 = vmatprep.mubr.msk.bf16.mxu1 %vm2708_vm0, %v2707_v0  ;;  %2159 = vmatpush3.bf16.msra.mxu1 %v3002_v27 }
0x137c   :  { %2160 = vmatprep.subr.bf16.mxu1 %v2707_v0 }
0x137f   :  { %2161 = vmatpush3.bf16.msra.mxu1 %v3025_v43 }
0x1380   :  { %2174 = vmatprep.subr.bf16.mxu1 %v2707_v0 }
0x1382   :  { %2163 = vmatmul.mubr.msk.bf16.vlgmr.msra.gmra.mxu1 %vm280_vm1, %v1041_v44 }
0x1383   :  { %2175 = vmatpush3.bf16.msra.mxu1 %v3002_v27  ;;  %2178 = vmatprep.mubr.msk.bf16.mxu1 %vm2708_vm0, %v2707_v0 }
0x1384   :  { %2176 = vmatprep.subr.bf16.mxu1 %v2707_v0 }
0x1387   :  { %2177 = vmatpush3.bf16.msra.mxu1 %v3025_v43 }
0x1388   :  { %2190 = vmatprep.subr.bf16.mxu1 %v2707_v0 }
0x143a   :  { %v921_v53 = vpop.f32.mrf.mxu1 }
0x143b   :  { %v928_v55 = vadd.f32 %v927_v54, %v921_v53 }
0x143c   :  { %v2148_v56 = vpop.f32.mrf.mxu1 }
0x143d   :  { %2347 = vtanh.f32 %v928_v55  ;;  %v1956_v60 = vmul.f32 -1.442695, %v928_v55 }
0x143e   :  { %v924_v57 = vpop.f32.mrf.mxu1 }
0x143f   :  { %2349 = vpow2.f32 %v1956_v60 }
0x1440   :  { %v2149_v58 = vpop.f32.mrf.mxu1 }
0x144a   :  { %v2348_v59 = vpop.eup %2347 }
0x144b   :  { %938 = vrot.lane.b32.xlu1 %v2348_v59, %s2697_s26  ;;  %v1092_v59 = vpop.f32.mrf.mxu1 }
0x144c   :  { %v2350_v61 = vpop.eup %2349 }
0x144d   :  { %v932_v62 = vadd.f32 1.0, %v2350_v61  ;;  %v2164_v60 = vpop.f32.mrf.mxu1 }
0x144f   :  { %2351 = vrcp.f32 %v932_v62  ;;  %v1095_v61 = vpop.f32.mrf.mxu1 }
0x1451   :  { %v2165_v62 = vpop.f32.mrf.mxu1 }
0x145c   :  { %v2352_v63 = vpop.eup %2351 }
0x145d   :  { %v936_v7 = vmul.f32 %v2352_v63, %v861_v47 }
0x14bd   :  { %v939_v1 = vpop.permute.xlu1 %938 }
0x14be   :  { %v941_v2 = vmul.f32 %v2352_v63, %v939_v1 }
0x14c0   :  { %943 = vrot.lane.b32.xlu0 %v941_v2, %s2709_s8 }
0x14c4   :  { %358 = vrot.lane.b32.xlu0 %v2880_v37, %s2709_s8 }
0x14c8   :  { %701 = vrot.lane.b32.xlu0 %v700_v4, %s2709_s8 }
0x14cc   :  { %2258 = vrot.lane.b32.xlu0 %v2924_v46, %s2709_s8 }
0x1532   :  { %v944_v9 = vpop.permute.xlu0 %943 }
0x1533   :  { %v2972_v10 = vadd.f32 %v944_v9, %v936_v7 }
0x1535   :  { %2353 = vtanh.f32 %v2972_v10 }
0x1536   :  { %v359_v37 = vpop.permute.xlu0 %358 }
0x1537   :  { %v365_v46 = vsel %vm2975_vm5, %v359_v37, %v364_v12 }
0x1538   :  { %366 = vst [vmem:[#allocation2] sm:$0x1] %v365_v46 }
0x153a   :  { %v702_v14 = vpop.permute.xlu0 %701 }
0x153b   :  { %v708_v15 = vsel %vm2983_vm8, %v702_v14, %v707_v13 }
0x153c   :  { %709 = vst [vmem:[#allocation2] sm:$0x4] %v708_v15 }
0x153e   :  { %v2259_v16 = vpop.permute.xlu0 %2258 }
0x153f   :  { %v450_v17 = vld [vmem:[#allocation2] sm:$0x1]  ;;  %v2260_v18 = vunpack.i.l.bf16 %v2259_v16  ;;  %v2261_v48 = vunpack.i.h.bf16 %v2259_v16 }
0x1541   :  { %v451_v20 = vsel %vm2990_vm10, %v2260_v18, %v450_v17 }
0x1542   :  { %v2354_v5 = vpop.eup %2353  ;;  %452 = vst [vmem:[#allocation2] sm:$0x1] %v451_v20 }
0x1543   :  { %949 = vrot.lane.b32.xlu1 %v2354_v5, %s2697_s26  ;;  %v794_v54 = vld [vmem:[#allocation2] sm:$0x4] }
0x1547   :  { %529 = vrot.lane.b32.xlu1 %v528_v21, %s2709_s8 }
0x154b   :  { %873 = vrot.lane.b32.xlu1 %v872_v22, %s2709_s8 }
0x15b5   :  { %v950_v24 = vpop.permute.xlu1 %949 }
0x15b6   :  { %v3000_v25 = vmul.f32 %v2352_v63, %v950_v24  ;;  %v1958_v63 = vld [vmem:[#allocation18] ss:$0 sm:$0xff] }
0x15b8   :  { %v2003_v31 = vpack.c.bf16 %v3000_v25, %v3000_v25 }
0x15b9   :  { %v530_v33 = vpop.permute.xlu1 %529 }
0x15ba   :  { %v958_v34 = vshll.u32 %v2003_v31, 16  ;;  %v536_v35 = vsel %vm3005_vm13, %v530_v33, %v535_v30 }
0x15bb   :  { %537 = vst [vmem:[#allocation2] sm:$0x2] %v536_v35 }
0x15bc   :  { %v960_v39 = vrot.slane %v958_v34, 5 }
0x15bd   :  { %v874_v40 = vpop.permute.xlu1 %873 }
0x15be   :  { %v880_v41 = vsel %vm3018_vm2, %v874_v40, %v879_v36  ;;  %v2262_v42 = vpack.i.bf16 %v960_v39, %v788_v38 }
0x15bf   :  { %881 = vst [vmem:[#allocation2] sm:$0x8] %v880_v41 }
0x15c0   :  { %2263 = vrot.lane.b32.xlu1 %v2262_v42, %s2709_s8 }
0x15c2   :  { %v622_v49 = vld [vmem:[#allocation2] sm:$0x2] }
0x15c3   :  { %v623_v50 = vsel %vm3030_vm4, %v2261_v48, %v622_v49 }
0x15c4   :  { %624 = vst [vmem:[#allocation2] sm:$0x2] %v623_v50  ;;  %1108 = vrot.lane.b32.xlu1 %v1107_v45, %s2709_s8 }
0x15c6   :  { %v966_v55 = vld [vmem:[#allocation2] sm:$0x8] }
0x1632   :  { %v2264_v51 = vpop.permute.xlu1 %2263 }
0x1633   :  { %v2266_v52 = vunpack.i.h.bf16 %v2264_v51  ;;  %v2265_v53 = vunpack.i.l.bf16 %v2264_v51 }
0x1635   :  { %v967_v56 = vsel %vm3053_vm12, %v2266_v52, %v966_v55  ;;  %v795_v57 = vsel %vm3048_vm11, %v2265_v53, %v794_v54 }
0x1636   :  { %968 = vst [vmem:[#allocation2] sm:$0x8] %v967_v56  ;;  %796 = vst [vmem:[#allocation2] sm:$0x4] %v795_v57  ;;  %v1109_v20 = vpop.permute.xlu1 %1108 }
0x163d   :  { %v969_v58 = vld [vmem:[#allocation2] sm:$0xf] }
0x163e   :  { %2155 = vmatmul.mubr.msk.bf16.vlgmr.msra.gmra.mxu0 %vm280_vm1, %v969_v58 }
0x163f   :  { %2167 = vmatpush3.bf16.msra.mxu0 %v3002_v27  ;;  %2170 = vmatprep.mubr.msk.bf16.mxu0 %vm2708_vm0, %v2707_v0 }
0x1640   :  { %2168 = vmatprep.subr.bf16.mxu0 %v2707_v0 }
0x1643   :  { %2169 = vmatpush3.bf16.msra.mxu0 %v3025_v43 }
0x1644   :  { %2182 = vmatprep.subr.bf16.mxu0 %v2707_v0 }
0x16fe   :  { %v1030_v1 = vpop.f32.mrf.mxu0 }
0x16ff   :  { %v1031_v2 = vadd.f32 %v1958_v63, %v1030_v1 }
0x1700   :  { %v2156_v4 = vpop.f32.mrf.mxu0 }
0x1701   :  { %1036 = vst [vmem:[#allocation3] sm:$0xff] %v1031_v2 }
0x1702   :  { %v1033_v7 = vpop.f32.mrf.mxu0 }
0x1704   :  { %v2157_v9 = vpop.f32.mrf.mxu0 }
0x1708   :  { %v1098_v12 = vld [vmem:[#allocation3] sm:$0x1]  ;;  %v1183_v33 = vld [vmem:[#allocation3 + $0x1] sm:$0x1]  ;;  %v1267_v58 = vld [vmem:[#allocation3 + $0x2] sm:$0x1] }
0x1709   :  { %v1099_v37 = vadd.f32 %v1098_v12, %v1092_v59 }
0x170b   :  { %2355 = vtanh.f32 %v1099_v37  ;;  %v1965_v13 = vmul.f32 -1.442695, %v1099_v37 }
0x170d   :  { %2357 = vpow2.f32 %v1965_v13 }
0x1718   :  { %v2356_v46 = vpop.eup %2355 }
0x1719   :  { %1113 = vrot.lane.b32.xlu0 %v2356_v46, %s2697_s26 }
0x171a   :  { %v2358_v14 = vpop.eup %2357 }
0x171b   :  { %v1103_v15 = vadd.f32 1.0, %v2358_v14 }
0x171d   :  { %2359 = vrcp.f32 %v1103_v15 }
0x172a   :  { %v2360_v16 = vpop.eup %2359 }
0x172b   :  { %v1111_v5 = vmul.f32 %v2360_v16, %v1109_v20 }
0x178b   :  { %v1114_v17 = vpop.permute.xlu0 %1113 }
0x178c   :  { %v1116_v18 = vmul.f32 %v2360_v16, %v1114_v17 }
0x178e   :  { %1118 = vrot.lane.b32.xlu0 %v1116_v18, %s2709_s8 }
0x1800   :  { %v1119_v21 = vpop.permute.xlu0 %1118 }
0x1801   :  { %v1121_v22 = vadd.f32 %v1119_v21, %v1111_v5  ;;  %v1349_v5 = vld [vmem:[#allocation3 + $0x3] sm:$0x1] }
0x1803   :  { %2361 = vtanh.f32 %v1121_v22 }
0x1810   :  { %v2362_v24 = vpop.eup %2361 }
0x1811   :  { %1124 = vrot.lane.b32.xlu1 %v2362_v24, %s2697_s26 }
0x1883   :  { %v1125_v26 = vpop.permute.xlu1 %1124 }
0x1884   :  { %v1127_v30 = vmul.f32 %v2360_v16, %v1125_v26 }
0x1886   :  { %v3071_v19 = vpack.c.bf16 %v1127_v30, %v1127_v30 }
0x1888   :  { %1138 = vrot.lane.b32.xlu0 %v3071_v19, %s2709_s8 }
0x18fa   :  { %v1139_v31 = vpop.permute.xlu0 %1138 }
0x18fb   :  { %2171 = vmatmul.mubr.msk.bf16.vlgmr.msra.gmra.mxu0 %vm280_vm1, %v1139_v31 }
0x18fc   :  { %2183 = vmatpush3.bf16.msra.mxu0 %v3002_v27  ;;  %2186 = vmatprep.mubr.msk.bf16.mxu0 %vm2708_vm0, %v2707_v0 }
0x18fd   :  { %2184 = vmatprep.subr.bf16.mxu0 %v2707_v0 }
0x1900   :  { %2185 = vmatpush3.bf16.msra.mxu0 %v3025_v43 }
0x1901   :  { %2198 = vmatprep.subr.bf16.mxu0 %v2707_v0 }
0x19bb   :  { %v1177_v32 = vpop.f32.mrf.mxu0 }
0x19bc   :  { %v1184_v34 = vadd.f32 %v1183_v33, %v1177_v32 }
0x19bd   :  { %v2172_v35 = vpop.f32.mrf.mxu0 }
0x19be   :  { %2363 = vtanh.f32 %v1184_v34  ;;  %v1968_v40 = vmul.f32 -1.442695, %v1184_v34 }
0x19bf   :  { %v1180_v36 = vpop.f32.mrf.mxu0 }
0x19c0   :  { %2365 = vpow2.f32 %v1968_v40 }
0x19c1   :  { %v2173_v38 = vpop.f32.mrf.mxu0 }
0x19cb   :  { %v2364_v39 = vpop.eup %2363 }
0x19cc   :  { %1194 = vrot.lane.b32.xlu1 %v2364_v39, %s2697_s26 }
0x19cd   :  { %v2366_v41 = vpop.eup %2365 }
0x19ce   :  { %v1188_v42 = vadd.f32 1.0, %v2366_v41 }
0x19d0   :  { %2367 = vrcp.f32 %v1188_v42 }
0x19dd   :  { %v2368_v44 = vpop.eup %2367 }
0x19de   :  { %v1192_v49 = vmul.f32 %v2368_v44, %v1121_v22 }
0x1a3e   :  { %v1195_v45 = vpop.permute.xlu1 %1194 }
0x1a3f   :  { %v1197_v48 = vmul.f32 %v2368_v44, %v1195_v45 }
0x1a41   :  { %1199 = vrot.lane.b32.xlu0 %v1197_v48, %s2709_s8 }
0x1ab3   :  { %v1200_v50 = vpop.permute.xlu0 %1199 }
0x1ab4   :  { %v1202_v51 = vadd.f32 %v1200_v50, %v1192_v49 }
0x1ab6   :  { %2369 = vtanh.f32 %v1202_v51 }
0x1ac3   :  { %v2370_v52 = vpop.eup %2369 }
0x1ac4   :  { %1205 = vrot.lane.b32.xlu1 %v2370_v52, %s2697_s26 }
0x1b36   :  { %v1206_v53 = vpop.permute.xlu1 %1205 }
0x1b37   :  { %v1208_v54 = vmul.f32 %v2368_v44, %v1206_v53 }
0x1b39   :  { %v3085_v55 = vpack.c.bf16 %v1208_v54, %v1208_v54  ;;  %v1434_v54 = vld [vmem:[#allocation3 + $0x4] sm:$0x1] }
0x1b3b   :  { %1222 = vrot.lane.b32.xlu0 %v3085_v55, %s2709_s8  ;;  %v1214_v49 = vshll.u32 %v3085_v55, 16 }
0x1bad   :  { %v1223_v56 = vpop.permute.xlu0 %1222 }
0x1bae   :  { %2179 = vmatmul.mubr.msk.bf16.vlgmr.msra.gmra.mxu1 %vm280_vm1, %v1223_v56 }
0x1baf   :  { %2191 = vmatpush3.bf16.msra.mxu1 %v3002_v27  ;;  %2194 = vmatprep.mubr.msk.bf16.mxu1 %vm2708_vm0, %v2707_v0 }
0x1bb0   :  { %2192 = vmatprep.subr.bf16.mxu1 %v2707_v0 }
0x1bb3   :  { %2193 = vmatpush3.bf16.msra.mxu1 %v3025_v43 }
0x1bb4   :  { %2206 = vmatprep.subr.bf16.mxu1 %v2707_v0 }
0x1c6e   :  { %v1261_v57 = vpop.f32.mrf.mxu1 }
0x1c6f   :  { %v1268_v59 = vadd.f32 %v1267_v58, %v1261_v57 }
0x1c70   :  { %v2180_v60 = vpop.f32.mrf.mxu1 }
0x1c71   :  { %2371 = vtanh.f32 %v1268_v59  ;;  %v1971_v1 = vmul.f32 -1.442695, %v1268_v59 }
0x1c72   :  { %v1264_v61 = vpop.f32.mrf.mxu1 }
0x1c73   :  { %2373 = vpow2.f32 %v1971_v1 }
0x1c74   :  { %v2181_v62 = vpop.f32.mrf.mxu1 }
0x1c7e   :  { %v2372_v63 = vpop.eup %2371 }
0x1c7f   :  { %1278 = vrot.lane.b32.xlu1 %v2372_v63, %s2697_s26 }
0x1c80   :  { %v2374_v2 = vpop.eup %2373 }
0x1c81   :  { %v1272_v4 = vadd.f32 1.0, %v2374_v2 }
0x1c83   :  { %2375 = vrcp.f32 %v1272_v4 }
0x1c90   :  { %v2376_v7 = vpop.eup %2375 }
0x1c91   :  { %v1276_v37 = vmul.f32 %v2376_v7, %v1202_v51 }
0x1cf1   :  { %v1279_v9 = vpop.permute.xlu1 %1278 }
0x1cf2   :  { %v1281_v12 = vmul.f32 %v2376_v7, %v1279_v9 }
0x1cf4   :  { %1283 = vrot.lane.b32.xlu0 %v1281_v12, %s2709_s8 }
0x1d66   :  { %v1284_v46 = vpop.permute.xlu0 %1283 }
0x1d67   :  { %v1286_v13 = vadd.f32 %v1284_v46, %v1276_v37 }
0x1d69   :  { %2377 = vtanh.f32 %v1286_v13 }
0x1d76   :  { %v2378_v14 = vpop.eup %2377 }
0x1d77   :  { %1289 = vrot.lane.b32.xlu1 %v2378_v14, %s2697_s26 }
0x1de9   :  { %v1290_v15 = vpop.permute.xlu1 %1289 }
0x1dea   :  { %v1292_v16 = vmul.f32 %v2376_v7, %v1290_v15 }
0x1dec   :  { %v3099_v17 = vpack.c.bf16 %v1292_v16, %v1292_v16  ;;  %v1516_v16 = vld [vmem:[#allocation3 + $0x5] sm:$0x1] }
0x1dee   :  { %1304 = vrot.lane.b32.xlu0 %v3099_v17, %s2709_s8  ;;  %v1297_v11 = vrot.slane %v3099_v17, 7  ;;  %v2288_v17 = vld [vmem:[%s3224_s9] sm:$0xff]  }
0x1e60   :  { %v1305_v18 = vpop.permute.xlu0 %1304 }
0x1e61   :  { %2187 = vmatmul.mubr.msk.bf16.vlgmr.msra.gmra.mxu0 %vm280_vm1, %v1305_v18 }
0x1e62   :  { %2199 = vmatpush3.bf16.msra.mxu0 %v3002_v27  ;;  %2202 = vmatprep.mubr.msk.bf16.mxu0 %vm2708_vm0, %v2707_v0 }
0x1e63   :  { %2200 = vmatprep.subr.bf16.mxu0 %v2707_v0 }
0x1e66   :  { %2201 = vmatpush3.bf16.msra.mxu0 %v3025_v43 }
0x1e67   :  { %2214 = vmatprep.subr.bf16.mxu0 %v2707_v0 }
0x1f21   :  { %v1343_v20 = vpop.f32.mrf.mxu0 }
0x1f22   :  { %v1350_v21 = vadd.f32 %v1349_v5, %v1343_v20 }
0x1f23   :  { %v2188_v22 = vpop.f32.mrf.mxu0 }
0x1f24   :  { %2379 = vtanh.f32 %v1350_v21  ;;  %v1974_v31 = vmul.f32 -1.442695, %v1350_v21 }
0x1f25   :  { %v1346_v24 = vpop.f32.mrf.mxu0 }
0x1f26   :  { %2381 = vpow2.f32 %v1974_v31 }
0x1f27   :  { %v2189_v26 = vpop.f32.mrf.mxu0 }
0x1f31   :  { %v2380_v30 = vpop.eup %2379 }
0x1f32   :  { %1360 = vrot.lane.b32.xlu1 %v2380_v30, %s2697_s26 }
0x1f33   :  { %v2382_v32 = vpop.eup %2381 }
0x1f34   :  { %v1354_v33 = vadd.f32 1.0, %v2382_v32 }
0x1f36   :  { %2383 = vrcp.f32 %v1354_v33 }
0x1f43   :  { %v2384_v34 = vpop.eup %2383 }
0x1f44   :  { %v1358_v38 = vmul.f32 %v2384_v34, %v1286_v13 }
0x1fa4   :  { %v1361_v35 = vpop.permute.xlu1 %1360 }
0x1fa5   :  { %v1363_v36 = vmul.f32 %v2384_v34, %v1361_v35 }
0x1fa7   :  { %1365 = vrot.lane.b32.xlu0 %v1363_v36, %s2709_s8 }
0x2019   :  { %v1366_v39 = vpop.permute.xlu0 %1365 }
0x201a   :  { %v1368_v40 = vadd.f32 %v1366_v39, %v1358_v38 }
0x201c   :  { %2385 = vtanh.f32 %v1368_v40 }
0x2029   :  { %v2386_v41 = vpop.eup %2385 }
0x202a   :  { %1371 = vrot.lane.b32.xlu1 %v2386_v41, %s2697_s26 }
0x209c   :  { %v1372_v42 = vpop.permute.xlu1 %1371 }
0x209d   :  { %v1374_v44 = vmul.f32 %v2384_v34, %v1372_v42  ;;  %v1601_v42 = vld [vmem:[#allocation3 + $0x6] sm:$0x1] }
0x209f   :  { %v1375_v45 = vpack.c.bf16 %v1374_v44, %v1374_v44 }
0x20a1   :  { %v1380_v48 = vshll.u32 %v1375_v45, 16  ;;  %1389 = vrot.lane.b32.xlu0 %v1375_v45, %s2709_s8 }
0x20a3   :  { %v1382_v50 = vrot.slane %v1380_v48, 7 }
0x20a5   :  { %v3115_v51 = vpack.i.bf16 %v1382_v50, %v1214_v49 }
0x2113   :  { %v1390_v52 = vpop.permute.xlu0 %1389 }
0x2114   :  { %2195 = vmatmul.mubr.msk.bf16.vlgmr.msra.gmra.mxu1 %vm280_vm1, %v1390_v52 }
0x2115   :  { %2207 = vmatpush3.bf16.msra.mxu1 %v3002_v27  ;;  %2210 = vmatprep.mubr.msk.bf16.mxu1 %vm2708_vm0, %v2707_v0 }
0x2116   :  { %2208 = vmatprep.subr.bf16.mxu1 %v2707_v0 }
0x2119   :  { %2209 = vmatpush3.bf16.msra.mxu1 %v3025_v43 }
0x211a   :  { %2222 = vmatprep.subr.bf16.mxu1 %v2707_v0 }
0x21d4   :  { %v1428_v53 = vpop.f32.mrf.mxu1 }
0x21d5   :  { %v1435_v55 = vadd.f32 %v1434_v54, %v1428_v53 }
0x21d6   :  { %v2196_v56 = vpop.f32.mrf.mxu1 }
0x21d7   :  { %2387 = vtanh.f32 %v1435_v55  ;;  %v1977_v60 = vmul.f32 -1.442695, %v1435_v55 }
0x21d8   :  { %v1431_v57 = vpop.f32.mrf.mxu1 }
0x21d9   :  { %2389 = vpow2.f32 %v1977_v60 }
0x21da   :  { %v2197_v58 = vpop.f32.mrf.mxu1 }
0x21e4   :  { %v2388_v59 = vpop.eup %2387 }
0x21e5   :  { %1445 = vrot.lane.b32.xlu1 %v2388_v59, %s2697_s26 }
0x21e6   :  { %v2390_v61 = vpop.eup %2389 }
0x21e7   :  { %v1439_v62 = vadd.f32 1.0, %v2390_v61 }
0x21e9   :  { %2391 = vrcp.f32 %v1439_v62 }
0x21f6   :  { %v2392_v63 = vpop.eup %2391 }
0x21f7   :  { %v1443_v4 = vmul.f32 %v2392_v63, %v1368_v40 }
0x2257   :  { %v1446_v1 = vpop.permute.xlu1 %1445 }
0x2258   :  { %v1448_v2 = vmul.f32 %v2392_v63, %v1446_v1 }
0x225a   :  { %1450 = vrot.lane.b32.xlu0 %v1448_v2, %s2709_s8 }
0x22cc   :  { %v1451_v7 = vpop.permute.xlu0 %1450 }
0x22cd   :  { %v1453_v9 = vadd.f32 %v1451_v7, %v1443_v4  ;;  %v1683_v7 = vld [vmem:[#allocation3 + $0x7] sm:$0x1] }
0x22cf   :  { %2393 = vtanh.f32 %v1453_v9 }
0x22dc   :  { %v2394_v12 = vpop.eup %2393 }
0x22dd   :  { %1456 = vrot.lane.b32.xlu1 %v2394_v12, %s2697_s26 }
0x234f   :  { %v1457_v37 = vpop.permute.xlu1 %1456 }
0x2350   :  { %v1459_v46 = vmul.f32 %v2392_v63, %v1457_v37 }
0x2352   :  { %v3127_v13 = vpack.c.bf16 %v1459_v46, %v1459_v46 }
0x2354   :  { %1471 = vrot.lane.b32.xlu0 %v3127_v13, %s2709_s8 }
0x23c6   :  { %v1472_v14 = vpop.permute.xlu0 %1471 }
0x23c7   :  { %2203 = vmatmul.mubr.msk.bf16.vlgmr.msra.gmra.mxu0 %vm280_vm1, %v1472_v14 }
0x23c8   :  { %2215 = vmatpush3.bf16.msra.mxu0 %v3002_v27  ;;  %2218 = vmatprep.mubr.msk.bf16.mxu0 %vm2708_vm0, %v2707_v0 }
0x23c9   :  { %2216 = vmatprep.subr.bf16.mxu0 %v2707_v0 }
0x23cc   :  { %2217 = vmatpush3.bf16.msra.mxu0 %v3025_v43 }
0x23cd   :  { %2230 = vmatprep.subr.bf16.mxu0 %v2707_v0 }
0x2487   :  { %v1510_v15 = vpop.f32.mrf.mxu0 }
0x2488   :  { %v1517_v18 = vadd.f32 %v1516_v16, %v1510_v15 }
0x2489   :  { %v2204_v20 = vpop.f32.mrf.mxu0 }
0x248a   :  { %2395 = vtanh.f32 %v1517_v18  ;;  %v1980_v27 = vmul.f32 -1.442695, %v1517_v18 }
0x248b   :  { %v1513_v5 = vpop.f32.mrf.mxu0 }
0x248c   :  { %2397 = vpow2.f32 %v1980_v27 }
0x248d   :  { %v2205_v21 = vpop.f32.mrf.mxu0 }
0x2497   :  { %v2396_v22 = vpop.eup %2395 }
0x2498   :  { %1527 = vrot.lane.b32.xlu1 %v2396_v22, %s2697_s26  ;;  %v1464_v22 = vrot.slane %v3127_v13, 6 }
0x2499   :  { %v2398_v24 = vpop.eup %2397 }
0x249a   :  { %v1521_v26 = vadd.f32 1.0, %v2398_v24 }
0x249c   :  { %2399 = vrcp.f32 %v1521_v26 }
0x24a9   :  { %v2400_v30 = vpop.eup %2399 }
0x24aa   :  { %v1525_v32 = vmul.f32 %v2400_v30, %v1453_v9 }
0x250a   :  { %v1528_v31 = vpop.permute.xlu1 %1527 }
0x250b   :  { %v1530_v43 = vmul.f32 %v2400_v30, %v1528_v31 }
0x250d   :  { %1532 = vrot.lane.b32.xlu0 %v1530_v43, %s2709_s8 }
0x257f   :  { %v1533_v33 = vpop.permute.xlu0 %1532 }
0x2580   :  { %v1535_v34 = vadd.f32 %v1533_v33, %v1525_v32  ;;  %v1468_v32 = vld [vmem:[#allocation2] sm:$0x4] }
0x2582   :  { %2401 = vtanh.f32 %v1535_v34 }
0x258f   :  { %v2402_v35 = vpop.eup %2401 }
0x2590   :  { %1538 = vrot.lane.b32.xlu1 %v2402_v35, %s2697_s26 }
0x2602   :  { %v1539_v36 = vpop.permute.xlu1 %1538 }
0x2603   :  { %v1541_v38 = vmul.f32 %v2400_v30, %v1539_v36  ;;  %v1135_v30 = vld [vmem:[#allocation2] sm:$0x1] }
0x2605   :  { %v3141_v39 = vpack.c.bf16 %v1541_v38, %v1541_v38 }
0x2607   :  { %1556 = vrot.lane.b32.xlu0 %v3141_v39, %s2709_s8  ;;  %v1547_v3 = vshll.u32 %v3141_v39, 16 }
0x2609   :  { %v1549_v39 = vrot.slane %v1547_v3, 6 }
0x2679   :  { %v1557_v40 = vpop.permute.xlu0 %1556 }
0x267a   :  { %2211 = vmatmul.mubr.msk.bf16.vlgmr.msra.gmra.mxu1 %vm280_vm1, %v1557_v40 }
0x267b   :  { %2226 = vmatprep.mubr.msk.bf16.mxu1 %vm2708_vm0, %v2707_v0 }
0x273a   :  { %v1595_v41 = vpop.f32.mrf.mxu1 }
0x273b   :  { %v1602_v44 = vadd.f32 %v1601_v42, %v1595_v41  ;;  %v2287_v41 = vld [vmem:[%s3224_s9 + $0x8] sm:$0xff]   ;;  %s2710_s9 = smov 96  }
0x273c   :  { %v2212_v45 = vpop.f32.mrf.mxu1  ;;  %2223 = vmatpush3.bf16.msra.mxu1 %v2287_v41 }
0x273d   :  { %2403 = vtanh.f32 %v1602_v44  ;;  %v1983_v52 = vmul.f32 -1.442695, %v1602_v44  ;;  %v1301_v45 = vld [vmem:[#allocation2] sm:$0x2]  ;;  %2224 = vmatprep.subr.bf16.mxu1 %v2707_v0 }
0x273e   :  { %v1598_v48 = vpop.f32.mrf.mxu1 }
0x273f   :  { %2405 = vpow2.f32 %v1983_v52 }
0x2740   :  { %v2213_v49 = vpop.f32.mrf.mxu1  ;;  %2225 = vmatpush3.bf16.msra.mxu1 %v2288_v17 }
0x274a   :  { %v2404_v50 = vpop.eup %2403 }
0x274b   :  { %1612 = vrot.lane.b32.xlu1 %v2404_v50, %s2697_s26 }
0x274c   :  { %v2406_v53 = vpop.eup %2405 }
0x274d   :  { %v1606_v54 = vadd.f32 1.0, %v2406_v53 }
0x274f   :  { %2407 = vrcp.f32 %v1606_v54  ;;  %v1635_v54 = vld [vmem:[#allocation2] sm:$0x8] }
0x275c   :  { %v2408_v55 = vpop.eup %2407 }
0x275d   :  { %v1610_v58 = vmul.f32 %v2408_v55, %v1535_v34 }
0x27bd   :  { %v1613_v56 = vpop.permute.xlu1 %1612 }
0x27be   :  { %v1615_v57 = vmul.f32 %v2408_v55, %v1613_v56 }
0x27c0   :  { %1617 = vrot.lane.b32.xlu0 %v1615_v57, %s2709_s8 }
0x2832   :  { %v1618_v59 = vpop.permute.xlu0 %1617 }
0x2833   :  { %v1620_v60 = vadd.f32 %v1618_v59, %v1610_v58  ;;  %v2289_v58 = vld [vmem:[#allocation19 + $0x8] sm:$0xff]  }
0x2835   :  { %2409 = vtanh.f32 %v1620_v60 }
0x2842   :  { %v2410_v61 = vpop.eup %2409 }
0x2843   :  { %1623 = vrot.lane.b32.xlu1 %v2410_v61, %s2697_s26 }
0x28b5   :  { %v1624_v62 = vpop.permute.xlu1 %1623 }
0x28b6   :  { %v1626_v63 = vmul.f32 %v2408_v55, %v1624_v62 }
0x28b8   :  { %v1627_v1 = vpack.c.bf16 %v1626_v63, %v1626_v63 }
0x28ba   :  { %1638 = vrot.lane.b32.xlu0 %v1627_v1, %s2709_s8  ;;  %v1631_v38 = vrot.slane %v1627_v1, 5 }
0x292c   :  { %v1639_v2 = vpop.permute.xlu0 %1638 }
0x292d   :  { %2219 = vmatmul.mubr.msk.bf16.vlgmr.msra.gmra.mxu0 %vm280_vm1, %v1639_v2 }
0x292e   :  { %2234 = vmatprep.mubr.msk.bf16.mxu0 %vm2708_vm0, %v2707_v0  ;;  %vm1726_vm0 = vcmask 1040384   ;;  %2231 = vmatpush3.bf16.msra.mxu0 %v2289_v58 }
0x292f   :  { %2232 = vmatprep.subr.bf16.mxu0 %v2707_v0 }
0x29ed   :  { %v1677_v4 = vpop.f32.mrf.mxu0 }
0x29ee   :  { %v1684_v9 = vadd.f32 %v1683_v7, %v1677_v4 }
0x29ef   :  { %v2220_v12 = vpop.f32.mrf.mxu0 }
0x29f0   :  { %2411 = vtanh.f32 %v1684_v9  ;;  %v1986_v15 = vmul.f32 -1.442695, %v1684_v9  ;;  %v2290_v9 = vld [vmem:[#allocation19] sm:$0xff]   ;;  %v1988_v12 = vld [vmem:[%s3225_s10] ss:$0 sm:$0xff] }
0x29f1   :  { %v1680_v37 = vpop.f32.mrf.mxu0  ;;  %2233 = vmatpush3.bf16.msra.mxu0 %v2290_v9 }
0x29f2   :  { %2413 = vpow2.f32 %v1986_v15 }
0x29f3   :  { %v2221_v46 = vpop.f32.mrf.mxu0 }
0x29fd   :  { %v2412_v14 = vpop.eup %2411 }
0x29fe   :  { %1694 = vrot.lane.b32.xlu1 %v2412_v14, %s2697_s26 }
0x29ff   :  { %v2414_v16 = vpop.eup %2413 }
0x2a00   :  { %v1688_v18 = vadd.f32 1.0, %v2414_v16 }
0x2a02   :  { %2415 = vrcp.f32 %v1688_v18 }
0x2a0f   :  { %v2416_v20 = vpop.eup %2415 }
0x2a10   :  { %v1692_v27 = vmul.f32 %v2416_v20, %v1620_v60 }
0x2a70   :  { %v1695_v5 = vpop.permute.xlu1 %1694 }
0x2a71   :  { %v1697_v21 = vmul.f32 %v2416_v20, %v1695_v5 }
0x2a73   :  { %1699 = vrot.lane.b32.xlu0 %v1697_v21, %s2709_s8 }
0x2a77   :  { %1132 = vrot.lane.b32.xlu0 %v3071_v19, %s2709_s8 }
0x2a7b   :  { %1465 = vrot.lane.b32.xlu0 %v1464_v22, %s2709_s8 }
0x2a7f   :  { %2268 = vrot.lane.b32.xlu0 %v3115_v51, %s2709_s8 }
0x2ae5   :  { %v1700_v24 = vpop.permute.xlu0 %1699 }
0x2ae6   :  { %v1702_v26 = vadd.f32 %v1700_v24, %v1692_v27 }
0x2ae8   :  { %2417 = vtanh.f32 %v1702_v26  ;;  %v1735_v59 = vrot.slane %v1702_v26, 7 }
0x2ae9   :  { %v1133_v31 = vpop.permute.xlu0 %1132 }
0x2aea   :  { %v1136_v43 = vsel %vm2975_vm5, %v1133_v31, %v1135_v30  ;;  %v1737_v61 = vsel %vm1726_vm0, %v2972_v10, %v1735_v59  ;;  %vm1732_vm5 = vcmask 254976  }
0x2aeb   :  { %1137 = vst [vmem:[#allocation2] sm:$0x1] %v1136_v43 }
0x2aed   :  { %v1466_v33 = vpop.permute.xlu0 %1465 }
0x2aee   :  { %v1469_v19 = vsel %vm2983_vm8, %v1466_v33, %v1468_v32 }
0x2aef   :  { %1470 = vst [vmem:[#allocation2] sm:$0x4] %v1469_v19 }
0x2af1   :  { %v2269_v13 = vpop.permute.xlu0 %2268 }
0x2af2   :  { %v1219_v34 = vld [vmem:[#allocation2] sm:$0x1]  ;;  %v2270_v35 = vunpack.i.l.bf16 %v2269_v13  ;;  %v2271_v29 = vunpack.i.h.bf16 %v2269_v13 }
0x2af4   :  { %v1220_v51 = vsel %vm2990_vm10, %v2270_v35, %v1219_v34 }
0x2af5   :  { %v2418_v36 = vpop.eup %2417  ;;  %1221 = vst [vmem:[#allocation2] sm:$0x1] %v1220_v51 }
0x2af6   :  { %1705 = vrot.lane.b32.xlu1 %v2418_v36, %s2697_s26  ;;  %v1553_v2 = vld [vmem:[#allocation2] sm:$0x4] }
0x2afa   :  { %1298 = vrot.lane.b32.xlu1 %v1297_v11, %s2709_s8 }
0x2afe   :  { %1632 = vrot.lane.b32.xlu1 %v1631_v38, %s2709_s8 }
0x2b68   :  { %v1706_v6 = vpop.permute.xlu1 %1705 }
0x2b69   :  { %v1708_v40 = vmul.f32 %v2416_v20, %v1706_v6 }
0x2b6b   :  { %v2011_v42 = vpack.c.bf16 %v1708_v40, %v1708_v40  ;;  %v1724_v44 = vrot.slane %v1708_v40, 7 }
0x2b6c   :  { %v1299_v48 = vpop.permute.xlu1 %1298 }
0x2b6d   :  { %v1714_v49 = vshll.u32 %v2011_v42, 16  ;;  %v1302_v50 = vsel %vm3005_vm13, %v1299_v48, %v1301_v45  ;;  %v1727_v52 = vsel %vm1726_vm0, %v3000_v25, %v1724_v44 }
0x2b6e   :  { %1303 = vst [vmem:[#allocation2] sm:$0x2] %v1302_v50  ;;  %1729 = vrot.lane.b32.xlu0 %v1727_v52, %s2709_s8 }
0x2b6f   :  { %v1716_v53 = vrot.slane %v1714_v49, 5 }
0x2b70   :  { %v1633_v55 = vpop.permute.xlu1 %1632 }
0x2b71   :  { %v1636_v56 = vsel %vm3018_vm2, %v1633_v55, %v1635_v54  ;;  %v2272_v57 = vpack.i.bf16 %v1716_v53, %v1549_v39 }
0x2b72   :  { %1637 = vst [vmem:[#allocation2] sm:$0x8] %v1636_v56 }
0x2b73   :  { %2273 = vrot.lane.b32.xlu1 %v2272_v57, %s2709_s8 }
0x2b75   :  { %v1386_v25 = vld [vmem:[#allocation2] sm:$0x2] }
0x2b76   :  { %v1387_v60 = vsel %vm3030_vm4, %v2271_v29, %v1386_v25 }
0x2b77   :  { %1388 = vst [vmem:[#allocation2] sm:$0x2] %v1387_v60  ;;  %1739 = vrot.lane.b32.xlu1 %v1737_v61, %s2710_s9 }
0x2b79   :  { %v1720_v4 = vld [vmem:[#allocation2] sm:$0x8] }
0x2be0   :  { %v1730_v28 = vpop.permute.xlu0 %1729 }
0x2be1   :  { %1733 = vst.msk [vmem:[#allocation22] sm:$0x3] %vm1732_vm5, %v1730_v28 }
0x2be5   :  { %v2274_v62 = vpop.permute.xlu1 %2273 }
0x2be6   :  { %v2276_v63 = vunpack.i.h.bf16 %v2274_v62  ;;  %v2275_v1 = vunpack.i.l.bf16 %v2274_v62 }
0x2be8   :  { %v1721_v0 = vsel %vm3053_vm12, %v2276_v63, %v1720_v4  ;;  %v1554_v47 = vsel %vm3048_vm11, %v2275_v1, %v1553_v2 }
0x2be9   :  { %1722 = vst [vmem:[#allocation2] sm:$0x8] %v1721_v0  ;;  %1555 = vst [vmem:[#allocation2] sm:$0x4] %v1554_v47  ;;  %v1740_v10 = vpop.permute.xlu1 %1739 }
0x2bea   :  { %1742 = vst.msk [vmem:[#allocation24] sm:$0x3] %vm1732_vm5, %v1740_v10 }
0x2bf0   :  { %v1743_v7 = vld [vmem:[#allocation2] sm:$0xf] }
0x2bf1   :  { %2227 = vmatmul.mubr.msk.bf16.vlgmr.msra.gmra.mxu1 %vm280_vm1, %v1743_v7 }
0x2cb1   :  { %v1804_v37 = vpop.f32.mrf.mxu1 }
0x2cb2   :  { %v1805_v46 = vadd.f32 %v1988_v12, %v1804_v37 }
0x2cb3   :  { %v2228_v23 = vpop.f32.mrf.mxu1 }
0x2cb4   :  { %v1810_v14 = vmax.f32 %v1805_v46, 0.0 }
0x2cb5   :  { %v1807_v15 = vpop.f32.mrf.mxu1 }
0x2cb6   :  { %v1811_v8 = vpack.c.bf16 %v1810_v14, %v1810_v14 }
0x2cb7   :  { %v2229_v16 = vpop.f32.mrf.mxu1 }
0x2cb8   :  { %2235 = vmatmul.mubr.msk.bf16.vlgmr.msra.gmra.mxu0 %vm280_vm1, %v1811_v8 }
0x2cb9   :  { %2630 = shalt.err (!%p2627_p12)
}
0x2cba   :  { %1898 = dma.vmem_to_hbm [thread:$0]  %s1896_s23, 32, %s3229_s14, [#allocation23]  }
0x2cbb   :  { %s2712_s2 = smov [#allocation24]  }
0x2cbc   :  { %s1905_s21 = sshll.u32 %s2712_s2, 4  ;;  %s1906_s21 = int_to_ptr.vmem [resolvable:$true] %s1905_s21 }
0x2cbd   :  { %s2639_s24 = scalar_lea.vmem %s1906_s21, 32  ;;  %p2644_p0 = scmp.lt.s32.totalorder %s1906_s21, %s1906_s21 }
0x2cbe   :  { %p2640_p13 = scmp.ne.s32.totalorder %s1906_s21, %s2639_s24  ;;  %p2645_p1 = scmp.lt.s32.totalorder %s2639_s24, %s2639_s24 }
0x2cc0   :  { %p2646_p2 = por %p2645_p1, %p2644_p0 }
0x2cc2   :  { %p2647_p3 = pnand %p2646_p2, %p2640_p13 }
0x2cc4   :  { %2650 = shalt.err (!%p2647_p3)
}
0x2cc5   :  { %1908 = dma.vmem_to_hbm [thread:$0]  %s1906_s21, 32, %s3230_s15, [#allocation23]   ;;  %v1992_v18 = vld [vmem:[%s3227_s12] ss:$0 sm:$0xff] }
0x2cc6   :  { %s2713_s4 = smov [#allocation21]  }
0x2cc7   :  { %s1885_s14 = sshll.u32 %s2713_s4, 4  ;;  %s1886_s14 = int_to_ptr.vmem [resolvable:$true] %s1885_s14 }
0x2cc8   :  { %s2659_s30 = scalar_lea.vmem %s1886_s14, 128  ;;  %p2664_p5 = scmp.lt.s32.totalorder %s1886_s14, %s1886_s14 }
0x2cc9   :  { %p2660_p4 = scmp.ne.s32.totalorder %s1886_s14, %s2659_s30  ;;  %p2665_p6 = scmp.lt.s32.totalorder %s2659_s30, %s2659_s30 }
0x2ccb   :  { %p2666_p7 = por %p2665_p6, %p2664_p5 }
0x2ccd   :  { %p2667_p8 = pnand %p2666_p7, %p2660_p4 }
0x2d78   :  { %v1872_v20 = vpop.f32.mrf.mxu0 }
0x2d79   :  { %v1873_v5 = vadd.f32 %v1992_v18, %v1872_v20 }
0x2d7a   :  { %v2236_v21 = vpop.f32.mrf.mxu0 }
0x2d7b   :  { %1878 = vst [vmem:[#allocation21] sm:$0xff] %v1873_v5 }
0x2d7c   :  { %v1875_v22 = vpop.f32.mrf.mxu0 }
0x2d7d   :  { %2670 = shalt.err (!%p2667_p8)
}
0x2d7e   :  { %1888 = dma.vmem_to_hbm [thread:$0]  %s1886_s14, 128, %s3228_s13, [#allocation6]   ;;  %v2237_v27 = vpop.f32.mrf.mxu0 }
0x2d7f   :  { %2691 = dma.done.wait [#allocation6], 128  }
0x2d80   :  { %2692 = vsyncadd [#allocation6], 4294967168 }
0x2d81   :  { %2693 = dma.done.wait [#allocation23], 64  }
0x2d82   :  { %2694 = vsyncadd [#allocation23], 4294967232 }
0x2d83   :  { %1918 = vsyncpa [#allocation5], 1 }
0x2d84   :  { %1919 = vsyncpa [#allocation8], 1 }
0x2d85   :  { %1920 = vsyncpa [#allocation11], 1 }
0x2d86   :  { %1921 = vsyncpa [#allocation14], 1 }
0x2d87   :  { %1922 = vsyncpa [#allocation17], 1 }
0x2d88   :  { %1923 = vsyncpa [#allocation20], 1 }
0x2d89   :  { %1924 = vsyncpa [#allocation6], 1 }
0x2d8a   :  { %1925 = vsyncpa [#allocation23], 1 }

</bundles_post_ra>
